<compile_context>
chip_gen: v7x
topology: tpu7x:2x2x1
jax: 0.10.0
libtpu: 0.0.40
codegen_flags: <defaults>
</compile_context>

<pallas_src>
import functools

import jax
import jax.numpy as jnp
import numpy as np
from jax import lax
from jax.experimental import pallas as pl
from jax.experimental.pallas import tpu as pltpu


def _elu(x):
    return jnp.where(x > 0.0, x, jnp.exp(x) - 1.0)


def _dot(a, b):
    return jnp.dot(a, b, preferred_element_type=jnp.float32)


def _dot_t(a, b):
    # a @ b^T without materializing a transpose (contract last dims of both).
    return lax.dot_general(a, b, (((1,), (1,)), ((), ())),
                           preferred_element_type=jnp.float32)


def _masked_attention(a_dst_col, a_src_row, adj):
    # STAGATE-style GATConv attention, dense form:
    #   e[i, j]    = sigmoid(a_dst[i] + a_src[j])
    #   attn[i, :] = softmax over incoming neighbours j of node i (mask = adj)
    # sigmoid is bounded in (0,1) -> no max-subtraction / -inf where needed;
    # multiplying by adj applies the mask.  Divides only on the (N,1) column.
    e = jax.nn.sigmoid(a_dst_col + a_src_row)                   # (N, N)
    p = jnp.exp(e) * adj
    inv = 1.0 / jnp.maximum(jnp.sum(p, axis=1, keepdims=True), 1e-30)
    return p * inv


def sthgc_kernel(x_all_ref, adj_ref, slab1_ref, slab2_ref, slab3_ref,
                 disc_b_ref,
                 z_ref, h4_ref, ret_ref, ret_a_ref, emb_ref,
                 *, N, F, H, D):
    bf16 = jnp.bfloat16

    x_all = x_all_ref[...]                  # (2N, F) = [features ; feat_a]
    adj = adj_ref[...]                      # (N, N)
    slab1 = slab1_ref[...]                  # (F+2, H): [w1 ; att_src ; att_dst]
    slab2 = slab2_ref[...]                  # (2H, max(F,D)): [w1^T ; w2 (padded)]
    slab3 = slab3_ref[...]                  # (3D, max(H,D)): [w2^T ; head1 ; disc_w]
    disc_b = disc_b_ref[0, 0]               # scalar bilinear bias (SMEM)

    w1 = slab1[:F]                          # (F, H)
    att_src = slab1[F:F + 1]                # (1, H)
    att_dst = slab1[F + 1:F + 2]            # (1, H)
    w1t = slab2[:H, :F]                     # (H, F)
    w2 = slab2[H:2 * H, :D]                 # (H, D)
    w2t = slab3[:D, :H]                     # (D, H)
    head1 = slab3[D:2 * D, :D]              # (D, D)
    disc_w = slab3[2 * D:3 * D, :D]         # (D, D)

    # ---- conv1 linear map, clean + corrupted branches stacked (2N rows) ----
    wh_all = _dot(x_all, w1)                # (2N, H)
    wh1, wh1a = wh_all[:N], wh_all[N:]
    a_dst_all = _dot_t(wh_all, att_dst)     # (2N, 1)
    a_src_c = _dot_t(att_src, wh1)          # (1, N)
    a_src_a = _dot_t(att_src, wh1a)         # (1, N)

    attn1 = _masked_attention(a_dst_all[:N], a_src_c, adj)
    attn1a = _masked_attention(a_dst_all[N:], a_src_a, adj)

    # bf16 operands for the quadratic matmuls, f32 accumulation.
    attn1_b = attn1.astype(bf16)
    adj_b = adj.astype(bf16)

    h1 = _elu(_dot(attn1_b, wh1.astype(bf16)))              # conv1(features) + ELU
    g1a = _dot(attn1a.astype(bf16), wh1a.astype(bf16))      # conv1(feat_a), no ELU

    # ---- conv2 (attention=False): plain linear map, both branches at once --
    h2_all = _dot(jnp.concatenate([h1, g1a], axis=0), w2)   # (2N, D)
    h2 = h2_all[:N]

    # ---- conv3: lin tied to conv2^T, attention tied to conv1's -------------
    wh3 = _dot(h2, w2t)                                     # (N, H)
    h3 = _elu(_dot(attn1_b, wh3.astype(bf16)))
    # ---- conv4: lin tied to conv1^T, attention=False ------------------------
    h4 = _dot(h3, w1t)                                      # (N, F)

    # ---- z / z_a = conv2 output @ head1 (both branches at once) ------------
    z_all = _dot(h2_all, head1)                             # (2N, D)
    z, z_a = z_all[:N], z_all[N:]

    # ---- AvgReadout + L2 normalize + sigmoid --------------------------------
    inv_row = 1.0 / jnp.maximum(jnp.sum(adj, axis=1, keepdims=True), 1e-30)

    def readout(v):
        g = _dot(adj_b, v.astype(bf16)) * inv_row           # (N, D)
        inv_norm = lax.rsqrt(
            jnp.maximum(jnp.sum(g * g, axis=1, keepdims=True), 1e-24))
        return jax.nn.sigmoid(g * inv_norm)

    emb = readout(z)
    emb_a = readout(z_a)

    # ---- Discriminator: nn.Bilinear(D, D, 1) --------------------------------
    def bilinear(h, c):
        return jnp.sum(_dot(h, disc_w) * c, axis=1, keepdims=True) + disc_b

    z_ref[...] = z
    h4_ref[...] = h4
    emb_ref[...] = emb
    # direct column stores instead of one-hot broadcast-multiply-add
    ret_ref[:, 0:1] = bilinear(z, emb)
    ret_ref[:, 1:2] = bilinear(z_a, emb)
    ret_a_ref[:, 0:1] = bilinear(z_a, emb_a)
    ret_a_ref[:, 1:2] = bilinear(z, emb_a)


def sthgc_forward(features, feat_a, adj, params):
    N, F = features.shape
    H = params["w1"].shape[1]
    D = params["w2"].shape[1]
    f32 = jnp.float32

    w1 = params["w1"].astype(f32)
    w2 = params["w2"].astype(f32)
    att_src = params["att_src"].astype(f32).reshape(1, H)
    att_dst = params["att_dst"].astype(f32).reshape(1, H)
    head1 = params["head1"].astype(f32)
    disc_w = params["disc_w"].astype(f32)
    disc_b = params["disc_b"].astype(f32).reshape(1, 1)

    def pad_cols(m, width):
        return jnp.pad(m, ((0, 0), (0, width - m.shape[1])))

    w2_width = max(F, D)
    w3_width = max(H, D)
    # Pack the small parameter tensors into three slabs (fewer input DMAs).
    slab1 = jnp.concatenate([w1, att_src, att_dst], axis=0)             # (F+2, H)
    slab2 = jnp.concatenate([pad_cols(w1.T, w2_width),
                             pad_cols(w2, w2_width)], axis=0)           # (2H, .)
    slab3 = jnp.concatenate([pad_cols(w2.T, w3_width),
                             pad_cols(head1, w3_width),
                             pad_cols(disc_w, w3_width)], axis=0)       # (3D, .)
    x_all = jnp.concatenate([features, feat_a], axis=0).astype(f32)     # (2N, F)

    vmem = pl.BlockSpec(memory_space=pltpu.MemorySpace.VMEM)
    smem = pl.BlockSpec(memory_space=pltpu.MemorySpace.SMEM)

    kernel = functools.partial(sthgc_kernel, N=N, F=F, H=H, D=D)
    out_shape = (
        jax.ShapeDtypeStruct((N, D), f32),   # z
        jax.ShapeDtypeStruct((N, F), f32),   # h4
        jax.ShapeDtypeStruct((N, 2), f32),   # ret
        jax.ShapeDtypeStruct((N, 2), f32),   # ret_a
        jax.ShapeDtypeStruct((N, D), f32),   # emb
    )
    # TODO(synk): for large N (esp. v7x's 64 MiB VMEM) switch to a row-tiled
    # parallel grid with online-softmax attention and lane-dense packed outputs
    # instead of whole-(N,N) VMEM blocks.
    return pl.pallas_call(
        kernel,
        out_shape=out_shape,
        in_specs=[vmem, vmem, vmem, vmem, vmem, smem],
        out_specs=tuple(vmem for _ in out_shape),
    )(x_all, adj.astype(f32), slab1, slab2, slab3, disc_b)


def reference_forward(features, feat_a, adj, params):
    """Pure-JAX reference mirroring the PyTorch module semantics."""
    dot = functools.partial(jnp.dot, precision=jax.lax.Precision.HIGHEST)
    w1, w2 = params["w1"], params["w2"]
    att_src, att_dst = params["att_src"], params["att_dst"]   # both (1, H)

    def gat_attention(wh):
        a_src = jnp.sum(wh * att_src, axis=1)                 # (N,)
        a_dst = jnp.sum(wh * att_dst, axis=1, keepdims=True)  # (N, 1)
        e = jax.nn.sigmoid(a_dst + a_src[None, :])
        logits = jnp.where(adj > 0.0, e, -1e30)
        m = jnp.max(logits, axis=1, keepdims=True)
        p = jnp.exp(logits - m) * adj
        return p / jnp.sum(p, axis=1, keepdims=True)

    wh1 = dot(features, w1)
    attn1 = gat_attention(wh1)
    h1 = jax.nn.elu(dot(attn1, wh1))
    h2 = dot(h1, w2)
    wh3 = dot(h2, w2.T)
    h3 = jax.nn.elu(dot(attn1, wh3))
    h4 = dot(h3, w1.T)
    z = dot(h2, params["head1"])

    wh1a = dot(feat_a, w1)
    attn1a = gat_attention(wh1a)
    z_a = dot(dot(dot(attn1a, wh1a), w2), params["head1"])

    row_sum = jnp.sum(adj, axis=1, keepdims=True)

    def readout(v):
        g = dot(adj, v) / row_sum
        g = g / jnp.maximum(jnp.linalg.norm(g, axis=1, keepdims=True), 1e-12)
        return jax.nn.sigmoid(g)

    emb, emb_a = readout(z), readout(z_a)

    def bilinear(h, c):
        return jnp.sum(dot(h, params["disc_w"]) * c, axis=1,
                       keepdims=True) + params["disc_b"]

    ret = jnp.concatenate([bilinear(z, emb), bilinear(z_a, emb)], axis=1)
    ret_a = jnp.concatenate([bilinear(z_a, emb_a), bilinear(z, emb_a)], axis=1)
    return z, h4, ret, ret_a, emb


if __name__ == "__main__":
    key = jax.random.PRNGKey(0)
    N, F, H, D = 64, 16, 32, 8          # hidden_dims = [in_dim, num_hidden, out_dim]
    keys = iter(jax.random.split(key, 16))

    def glorot(k, shape):
        fan_in, fan_out = shape[-2], shape[-1]
        bound = float(np.sqrt(6.0 / (fan_in + fan_out)))
        return jax.random.uniform(k, shape, jnp.float32, -bound, bound)

    params = dict(
        w1=glorot(next(keys), (F, H)),            # conv1.lin_src
        w2=glorot(next(keys), (H, D)),            # conv2.lin_src
        att_src=glorot(next(keys), (1, H)),       # conv1.att_src
        att_dst=glorot(next(keys), (1, H)),       # conv1.att_dst
        head1=glorot(next(keys), (D, D)),
        disc_w=glorot(next(keys), (D, D)),        # nn.Bilinear weight
        disc_b=jnp.zeros((1, 1), jnp.float32),    # nn.Bilinear bias (init 0)
    )

    features = jax.random.normal(next(keys), (N, F), jnp.float32)
    # corrupted features: row permutation (DGI-style corruption)
    feat_a = features[jax.random.permutation(next(keys), N)]
    adj = (jax.random.uniform(next(keys), (N, N)) < 0.15).astype(jnp.float32)
    adj = jnp.maximum(adj, jnp.eye(N, dtype=jnp.float32))   # self loops -> no empty rows

    outs = jax.block_until_ready(sthgc_forward(features, feat_a, adj, params))
    refs = jax.block_until_ready(reference_forward(features, feat_a, adj, params))

    for name, o, r in zip(("z", "h4", "ret", "ret_a", "emb"), outs, refs):
        assert o.shape == r.shape, (name, o.shape, r.shape)
        np.testing.assert_allclose(np.asarray(o), np.asarray(r),
                                   rtol=2e-2, atol=2e-2, err_msg=name)
    print("KERNEL_OK")
</pallas_src>

<mosaic_0001>
module attributes {stable_mosaic.version = 11 : i64} {
  func.func @sthgc_kernel(%arg0: memref<128x16xf32, #tpu.memory_space<vmem>>, %arg1: memref<64x64xf32, #tpu.memory_space<vmem>>, %arg2: memref<18x32xf32, #tpu.memory_space<vmem>>, %arg3: memref<64x16xf32, #tpu.memory_space<vmem>>, %arg4: memref<24x32xf32, #tpu.memory_space<vmem>>, %arg5: memref<1x1xf32, #tpu.memory_space<smem>>, %arg6: memref<64x8xf32, #tpu.memory_space<vmem>>, %arg7: memref<64x16xf32, #tpu.memory_space<vmem>>, %arg8: memref<64x2xf32, #tpu.memory_space<vmem>>, %arg9: memref<64x2xf32, #tpu.memory_space<vmem>>, %arg10: memref<64x8xf32, #tpu.memory_space<vmem>>) attributes {dimension_semantics = [], scalar_prefetch = 0 : i64, scratch_operands = 0 : i64, tpu.core_type = #tpu.core_type<tc>} {
    %c0 = arith.constant 0 : index
    %c0_0 = arith.constant 0 : index
    %0 = vector.load %arg0[%c0, %c0_0] : memref<128x16xf32, #tpu.memory_space<vmem>>, vector<128x16xf32>
    %c0_1 = arith.constant 0 : index
    %c0_2 = arith.constant 0 : index
    %1 = vector.load %arg1[%c0_1, %c0_2] : memref<64x64xf32, #tpu.memory_space<vmem>>, vector<64x64xf32>
    %c0_3 = arith.constant 0 : index
    %c0_4 = arith.constant 0 : index
    %2 = vector.load %arg2[%c0_3, %c0_4] : memref<18x32xf32, #tpu.memory_space<vmem>>, vector<18x32xf32>
    %c0_5 = arith.constant 0 : index
    %c0_6 = arith.constant 0 : index
    %3 = vector.load %arg3[%c0_5, %c0_6] : memref<64x16xf32, #tpu.memory_space<vmem>>, vector<64x16xf32>
    %c0_7 = arith.constant 0 : index
    %c0_8 = arith.constant 0 : index
    %4 = vector.load %arg4[%c0_7, %c0_8] : memref<24x32xf32, #tpu.memory_space<vmem>>, vector<24x32xf32>
    %c0_9 = arith.constant 0 : index
    %c0_10 = arith.constant 0 : index
    %5 = memref.load %arg5[%c0_9, %c0_10] : memref<1x1xf32, #tpu.memory_space<smem>>
    %6 = vector.extract_strided_slice %2 {offsets = [0, 0], sizes = [16, 32], strides = [1, 1]} : vector<18x32xf32> to vector<16x32xf32>
    %7 = vector.extract_strided_slice %2 {offsets = [16, 0], sizes = [1, 32], strides = [1, 1]} : vector<18x32xf32> to vector<1x32xf32>
    %8 = vector.extract_strided_slice %2 {offsets = [17, 0], sizes = [1, 32], strides = [1, 1]} : vector<18x32xf32> to vector<1x32xf32>
    %9 = vector.extract_strided_slice %3 {offsets = [0, 0], sizes = [32, 16], strides = [1, 1]} : vector<64x16xf32> to vector<32x16xf32>
    %10 = vector.extract_strided_slice %3 {offsets = [32, 0], sizes = [32, 8], strides = [1, 1]} : vector<64x16xf32> to vector<32x8xf32>
    %11 = vector.extract_strided_slice %4 {offsets = [0, 0], sizes = [8, 32], strides = [1, 1]} : vector<24x32xf32> to vector<8x32xf32>
    %12 = vector.extract_strided_slice %4 {offsets = [8, 0], sizes = [8, 8], strides = [1, 1]} : vector<24x32xf32> to vector<8x8xf32>
    %13 = vector.extract_strided_slice %4 {offsets = [16, 0], sizes = [8, 8], strides = [1, 1]} : vector<24x32xf32> to vector<8x8xf32>
    %cst = arith.constant dense<0.000000e+00> : vector<128x32xf32>
    %14 = tpu.matmul %0, %6, %cst {dimension_numbers = #tpu.dot_dimension_numbers<[1], [0], [0], [1], [0, 0, 1, 1], [], []>} : vector<128x16xf32>, vector<16x32xf32>, vector<128x32xf32> -> vector<128x32xf32>
    %15 = vector.extract_strided_slice %14 {offsets = [0, 0], sizes = [64, 32], strides = [1, 1]} : vector<128x32xf32> to vector<64x32xf32>
    %16 = vector.extract_strided_slice %14 {offsets = [64, 0], sizes = [64, 32], strides = [1, 1]} : vector<128x32xf32> to vector<64x32xf32>
    %cst_11 = arith.constant dense<0.000000e+00> : vector<128x1xf32>
    %17 = tpu.matmul %14, %8, %cst_11 {dimension_numbers = #tpu.dot_dimension_numbers<[1], [1], [0], [0], [0, 0, 1, 0], [], []>} : vector<128x32xf32>, vector<1x32xf32>, vector<128x1xf32> -> vector<128x1xf32>
    %cst_12 = arith.constant dense<0.000000e+00> : vector<1x64xf32>
    %18 = tpu.matmul %7, %15, %cst_12 {dimension_numbers = #tpu.dot_dimension_numbers<[1], [1], [0], [0], [0, 0, 1, 0], [], []>} : vector<1x32xf32>, vector<64x32xf32>, vector<1x64xf32> -> vector<1x64xf32>
    %cst_13 = arith.constant dense<0.000000e+00> : vector<1x64xf32>
    %19 = tpu.matmul %7, %16, %cst_13 {dimension_numbers = #tpu.dot_dimension_numbers<[1], [1], [0], [0], [0, 0, 1, 0], [], []>} : vector<1x32xf32>, vector<64x32xf32>, vector<1x64xf32> -> vector<1x64xf32>
    %20 = vector.extract_strided_slice %17 {offsets = [0, 0], sizes = [64, 1], strides = [1, 1]} : vector<128x1xf32> to vector<64x1xf32>
    %21 = vector.broadcast %20 : vector<64x1xf32> to vector<64x64xf32>
    %22 = vector.broadcast %18 : vector<1x64xf32> to vector<64x64xf32>
    %23 = arith.addf %21, %22 : vector<64x64xf32>
    %24 = arith.negf %23 : vector<64x64xf32>
    %25 = math.exp %24 : vector<64x64xf32>
    %cst_14 = arith.constant 1.000000e+00 : f32
    %26 = vector.broadcast %cst_14 : f32 to vector<64x64xf32>
    %27 = arith.addf %26, %25 : vector<64x64xf32>
    %28 = arith.divf %26, %27 : vector<64x64xf32>
    %29 = math.exp %28 : vector<64x64xf32>
    %30 = arith.mulf %29, %1 : vector<64x64xf32>
    %cst_15 = arith.constant dense<0.000000e+00> : vector<64xf32>
    %31 = vector.multi_reduction <add>, %30, %cst_15 [1] : vector<64x64xf32> to vector<64xf32>
    %32 = vector.shape_cast %31 : vector<64xf32> to vector<64x1xf32>
    %cst_16 = arith.constant 1.000000e-30 : f32
    %33 = vector.broadcast %cst_16 : f32 to vector<64x1xf32>
    %34 = arith.maximumf %32, %33 : vector<64x1xf32>
    %cst_17 = arith.constant 1.000000e+00 : f32
    %35 = vector.broadcast %cst_17 : f32 to vector<64x1xf32>
    %36 = arith.divf %35, %34 : vector<64x1xf32>
    %37 = vector.broadcast %36 : vector<64x1xf32> to vector<64x64xf32>
    %38 = arith.mulf %30, %37 : vector<64x64xf32>
    %39 = vector.extract_strided_slice %17 {offsets = [64, 0], sizes = [64, 1], strides = [1, 1]} : vector<128x1xf32> to vector<64x1xf32>
    %40 = vector.broadcast %39 : vector<64x1xf32> to vector<64x64xf32>
    %41 = vector.broadcast %19 : vector<1x64xf32> to vector<64x64xf32>
    %42 = arith.addf %40, %41 : vector<64x64xf32>
    %43 = arith.negf %42 : vector<64x64xf32>
    %44 = math.exp %43 : vector<64x64xf32>
    %cst_18 = arith.constant 1.000000e+00 : f32
    %45 = vector.broadcast %cst_18 : f32 to vector<64x64xf32>
    %46 = arith.addf %45, %44 : vector<64x64xf32>
    %47 = arith.divf %45, %46 : vector<64x64xf32>
    %48 = math.exp %47 : vector<64x64xf32>
    %49 = arith.mulf %48, %1 : vector<64x64xf32>
    %cst_19 = arith.constant dense<0.000000e+00> : vector<64xf32>
    %50 = vector.multi_reduction <add>, %49, %cst_19 [1] : vector<64x64xf32> to vector<64xf32>
    %51 = vector.shape_cast %50 : vector<64xf32> to vector<64x1xf32>
    %cst_20 = arith.constant 1.000000e-30 : f32
    %52 = vector.broadcast %cst_20 : f32 to vector<64x1xf32>
    %53 = arith.maximumf %51, %52 : vector<64x1xf32>
    %cst_21 = arith.constant 1.000000e+00 : f32
    %54 = vector.broadcast %cst_21 : f32 to vector<64x1xf32>
    %55 = arith.divf %54, %53 : vector<64x1xf32>
    %56 = vector.broadcast %55 : vector<64x1xf32> to vector<64x64xf32>
    %57 = arith.mulf %49, %56 : vector<64x64xf32>
    %58 = arith.truncf %38 : vector<64x64xf32> to vector<64x64xbf16>
    %59 = arith.truncf %1 : vector<64x64xf32> to vector<64x64xbf16>
    %60 = arith.truncf %15 : vector<64x32xf32> to vector<64x32xbf16>
    %cst_22 = arith.constant dense<0.000000e+00> : vector<64x32xf32>
    %61 = tpu.matmul %58, %60, %cst_22 {dimension_numbers = #tpu.dot_dimension_numbers<[1], [0], [0], [1], [0, 0, 1, 1], [], []>} : vector<64x64xbf16>, vector<64x32xbf16>, vector<64x32xf32> -> vector<64x32xf32>
    %cst_23 = arith.constant 0.000000e+00 : f32
    %62 = vector.broadcast %cst_23 : f32 to vector<64x32xf32>
    %63 = arith.cmpf ogt, %61, %62 : vector<64x32xf32>
    %64 = math.exp %61 : vector<64x32xf32>
    %cst_24 = arith.constant 1.000000e+00 : f32
    %65 = vector.broadcast %cst_24 : f32 to vector<64x32xf32>
    %66 = arith.subf %64, %65 : vector<64x32xf32>
    %67 = arith.select %63, %61, %66 : vector<64x32xi1>, vector<64x32xf32>
    %68 = arith.truncf %57 : vector<64x64xf32> to vector<64x64xbf16>
    %69 = arith.truncf %16 : vector<64x32xf32> to vector<64x32xbf16>
    %cst_25 = arith.constant dense<0.000000e+00> : vector<64x32xf32>
    %70 = tpu.matmul %68, %69, %cst_25 {dimension_numbers = #tpu.dot_dimension_numbers<[1], [0], [0], [1], [0, 0, 1, 1], [], []>} : vector<64x64xbf16>, vector<64x32xbf16>, vector<64x32xf32> -> vector<64x32xf32>
    %71 = tpu.concatenate %67, %70 in 0 : vector<64x32xf32>, vector<64x32xf32> -> vector<128x32xf32>
    %cst_26 = arith.constant dense<0.000000e+00> : vector<128x8xf32>
    %72 = tpu.matmul %71, %10, %cst_26 {dimension_numbers = #tpu.dot_dimension_numbers<[1], [0], [0], [1], [0, 0, 1, 1], [], []>} : vector<128x32xf32>, vector<32x8xf32>, vector<128x8xf32> -> vector<128x8xf32>
    %73 = vector.extract_strided_slice %72 {offsets = [0, 0], sizes = [64, 8], strides = [1, 1]} : vector<128x8xf32> to vector<64x8xf32>
    %cst_27 = arith.constant dense<0.000000e+00> : vector<64x32xf32>
    %74 = tpu.matmul %73, %11, %cst_27 {dimension_numbers = #tpu.dot_dimension_numbers<[1], [0], [0], [1], [0, 0, 1, 1], [], []>} : vector<64x8xf32>, vector<8x32xf32>, vector<64x32xf32> -> vector<64x32xf32>
    %75 = arith.truncf %74 : vector<64x32xf32> to vector<64x32xbf16>
    %cst_28 = arith.constant dense<0.000000e+00> : vector<64x32xf32>
    %76 = tpu.matmul %58, %75, %cst_28 {dimension_numbers = #tpu.dot_dimension_numbers<[1], [0], [0], [1], [0, 0, 1, 1], [], []>} : vector<64x64xbf16>, vector<64x32xbf16>, vector<64x32xf32> -> vector<64x32xf32>
    %cst_29 = arith.constant 0.000000e+00 : f32
    %77 = vector.broadcast %cst_29 : f32 to vector<64x32xf32>
    %78 = arith.cmpf ogt, %76, %77 : vector<64x32xf32>
    %79 = math.exp %76 : vector<64x32xf32>
    %cst_30 = arith.constant 1.000000e+00 : f32
    %80 = vector.broadcast %cst_30 : f32 to vector<64x32xf32>
    %81 = arith.subf %79, %80 : vector<64x32xf32>
    %82 = arith.select %78, %76, %81 : vector<64x32xi1>, vector<64x32xf32>
    %cst_31 = arith.constant dense<0.000000e+00> : vector<64x16xf32>
    %83 = tpu.matmul %82, %9, %cst_31 {dimension_numbers = #tpu.dot_dimension_numbers<[1], [0], [0], [1], [0, 0, 1, 1], [], []>} : vector<64x32xf32>, vector<32x16xf32>, vector<64x16xf32> -> vector<64x16xf32>
    %cst_32 = arith.constant dense<0.000000e+00> : vector<128x8xf32>
    %84 = tpu.matmul %72, %12, %cst_32 {dimension_numbers = #tpu.dot_dimension_numbers<[1], [0], [0], [1], [0, 0, 1, 1], [], []>} : vector<128x8xf32>, vector<8x8xf32>, vector<128x8xf32> -> vector<128x8xf32>
    %85 = vector.extract_strided_slice %84 {offsets = [0, 0], sizes = [64, 8], strides = [1, 1]} : vector<128x8xf32> to vector<64x8xf32>
    %86 = vector.extract_strided_slice %84 {offsets = [64, 0], sizes = [64, 8], strides = [1, 1]} : vector<128x8xf32> to vector<64x8xf32>
    %cst_33 = arith.constant dense<0.000000e+00> : vector<64xf32>
    %87 = vector.multi_reduction <add>, %1, %cst_33 [1] : vector<64x64xf32> to vector<64xf32>
    %88 = vector.shape_cast %87 : vector<64xf32> to vector<64x1xf32>
    %cst_34 = arith.constant 1.000000e-30 : f32
    %89 = vector.broadcast %cst_34 : f32 to vector<64x1xf32>
    %90 = arith.maximumf %88, %89 : vector<64x1xf32>
    %cst_35 = arith.constant 1.000000e+00 : f32
    %91 = vector.broadcast %cst_35 : f32 to vector<64x1xf32>
    %92 = arith.divf %91, %90 : vector<64x1xf32>
    %93 = arith.truncf %85 : vector<64x8xf32> to vector<64x8xbf16>
    %cst_36 = arith.constant dense<0.000000e+00> : vector<64x8xf32>
    %94 = tpu.matmul %59, %93, %cst_36 {dimension_numbers = #tpu.dot_dimension_numbers<[1], [0], [0], [1], [0, 0, 1, 1], [], []>} : vector<64x64xbf16>, vector<64x8xbf16>, vector<64x8xf32> -> vector<64x8xf32>
    %95 = vector.broadcast %92 : vector<64x1xf32> to vector<64x8xf32>
    %96 = arith.mulf %94, %95 : vector<64x8xf32>
    %97 = arith.mulf %96, %96 : vector<64x8xf32>
    %cst_37 = arith.constant dense<0.000000e+00> : vector<64xf32>
    %98 = vector.multi_reduction <add>, %97, %cst_37 [1] : vector<64x8xf32> to vector<64xf32>
    %99 = vector.shape_cast %98 : vector<64xf32> to vector<64x1xf32>
    %cst_38 = arith.constant 1.000000e-24 : f32
    %100 = vector.broadcast %cst_38 : f32 to vector<64x1xf32>
    %101 = arith.maximumf %99, %100 : vector<64x1xf32>
    %102 = math.rsqrt %101 : vector<64x1xf32>
    %103 = vector.broadcast %102 : vector<64x1xf32> to vector<64x8xf32>
    %104 = arith.mulf %96, %103 : vector<64x8xf32>
    %105 = arith.negf %104 : vector<64x8xf32>
    %106 = math.exp %105 : vector<64x8xf32>
    %cst_39 = arith.constant 1.000000e+00 : f32
    %107 = vector.broadcast %cst_39 : f32 to vector<64x8xf32>
    %108 = arith.addf %107, %106 : vector<64x8xf32>
    %109 = arith.divf %107, %108 : vector<64x8xf32>
    %110 = arith.truncf %86 : vector<64x8xf32> to vector<64x8xbf16>
    %cst_40 = arith.constant dense<0.000000e+00> : vector<64x8xf32>
    %111 = tpu.matmul %59, %110, %cst_40 {dimension_numbers = #tpu.dot_dimension_numbers<[1], [0], [0], [1], [0, 0, 1, 1], [], []>} : vector<64x64xbf16>, vector<64x8xbf16>, vector<64x8xf32> -> vector<64x8xf32>
    %112 = vector.broadcast %92 : vector<64x1xf32> to vector<64x8xf32>
    %113 = arith.mulf %111, %112 : vector<64x8xf32>
    %114 = arith.mulf %113, %113 : vector<64x8xf32>
    %cst_41 = arith.constant dense<0.000000e+00> : vector<64xf32>
    %115 = vector.multi_reduction <add>, %114, %cst_41 [1] : vector<64x8xf32> to vector<64xf32>
    %116 = vector.shape_cast %115 : vector<64xf32> to vector<64x1xf32>
    %cst_42 = arith.constant 1.000000e-24 : f32
    %117 = vector.broadcast %cst_42 : f32 to vector<64x1xf32>
    %118 = arith.maximumf %116, %117 : vector<64x1xf32>
    %119 = math.rsqrt %118 : vector<64x1xf32>
    %120 = vector.broadcast %119 : vector<64x1xf32> to vector<64x8xf32>
    %121 = arith.mulf %113, %120 : vector<64x8xf32>
    %122 = arith.negf %121 : vector<64x8xf32>
    %123 = math.exp %122 : vector<64x8xf32>
    %cst_43 = arith.constant 1.000000e+00 : f32
    %124 = vector.broadcast %cst_43 : f32 to vector<64x8xf32>
    %125 = arith.addf %124, %123 : vector<64x8xf32>
    %126 = arith.divf %124, %125 : vector<64x8xf32>
    %c0_44 = arith.constant 0 : index
    %c0_45 = arith.constant 0 : index
    %127 = vector.load %arg6[%c0_44, %c0_45] : memref<64x8xf32, #tpu.memory_space<vmem>>, vector<64x8xf32>
    tpu.vector_store %arg6[%c0_44, %c0_45], %85 {strides = array<i32>} : memref<64x8xf32, #tpu.memory_space<vmem>>, vector<64x8xf32>,
    %c0_46 = arith.constant 0 : index
    %c0_47 = arith.constant 0 : index
    %128 = vector.load %arg7[%c0_46, %c0_47] : memref<64x16xf32, #tpu.memory_space<vmem>>, vector<64x16xf32>
    tpu.vector_store %arg7[%c0_46, %c0_47], %83 {strides = array<i32>} : memref<64x16xf32, #tpu.memory_space<vmem>>, vector<64x16xf32>,
    %c0_48 = arith.constant 0 : index
    %c0_49 = arith.constant 0 : index
    %129 = vector.load %arg10[%c0_48, %c0_49] : memref<64x8xf32, #tpu.memory_space<vmem>>, vector<64x8xf32>
    tpu.vector_store %arg10[%c0_48, %c0_49], %109 {strides = array<i32>} : memref<64x8xf32, #tpu.memory_space<vmem>>, vector<64x8xf32>,
    %cst_50 = arith.constant dense<0.000000e+00> : vector<64x8xf32>
    %130 = tpu.matmul %85, %13, %cst_50 {dimension_numbers = #tpu.dot_dimension_numbers<[1], [0], [0], [1], [0, 0, 1, 1], [], []>} : vector<64x8xf32>, vector<8x8xf32>, vector<64x8xf32> -> vector<64x8xf32>
    %131 = arith.mulf %130, %109 : vector<64x8xf32>
    %cst_51 = arith.constant dense<0.000000e+00> : vector<64xf32>
    %132 = vector.multi_reduction <add>, %131, %cst_51 [1] : vector<64x8xf32> to vector<64xf32>
    %133 = vector.shape_cast %132 : vector<64xf32> to vector<64x1xf32>
    %134 = vector.broadcast %5 : f32 to vector<64x1xf32>
    %135 = arith.addf %133, %134 : vector<64x1xf32>
    %c0_52 = arith.constant 0 : index
    %c0_53 = arith.constant 0 : index
    %136 = vector.load %arg8[%c0_52, %c0_53] : memref<64x2xf32, #tpu.memory_space<vmem>>, vector<64x1xf32>
    tpu.vector_store %arg8[%c0_52, %c0_53], %135 {strides = array<i32>} : memref<64x2xf32, #tpu.memory_space<vmem>>, vector<64x1xf32>,
    %cst_54 = arith.constant dense<0.000000e+00> : vector<64x8xf32>
    %137 = tpu.matmul %86, %13, %cst_54 {dimension_numbers = #tpu.dot_dimension_numbers<[1], [0], [0], [1], [0, 0, 1, 1], [], []>} : vector<64x8xf32>, vector<8x8xf32>, vector<64x8xf32> -> vector<64x8xf32>
    %138 = arith.mulf %137, %109 : vector<64x8xf32>
    %cst_55 = arith.constant dense<0.000000e+00> : vector<64xf32>
    %139 = vector.multi_reduction <add>, %138, %cst_55 [1] : vector<64x8xf32> to vector<64xf32>
    %140 = vector.shape_cast %139 : vector<64xf32> to vector<64x1xf32>
    %141 = vector.broadcast %5 : f32 to vector<64x1xf32>
    %142 = arith.addf %140, %141 : vector<64x1xf32>
    %c0_56 = arith.constant 0 : index
    %c1 = arith.constant 1 : index
    %143 = vector.load %arg8[%c0_56, %c1] : memref<64x2xf32, #tpu.memory_space<vmem>>, vector<64x1xf32>
    tpu.vector_store %arg8[%c0_56, %c1], %142 {strides = array<i32>} : memref<64x2xf32, #tpu.memory_space<vmem>>, vector<64x1xf32>,
    %cst_57 = arith.constant dense<0.000000e+00> : vector<64x8xf32>
    %144 = tpu.matmul %86, %13, %cst_57 {dimension_numbers = #tpu.dot_dimension_numbers<[1], [0], [0], [1], [0, 0, 1, 1], [], []>} : vector<64x8xf32>, vector<8x8xf32>, vector<64x8xf32> -> vector<64x8xf32>
    %145 = arith.mulf %144, %126 : vector<64x8xf32>
    %cst_58 = arith.constant dense<0.000000e+00> : vector<64xf32>
    %146 = vector.multi_reduction <add>, %145, %cst_58 [1] : vector<64x8xf32> to vector<64xf32>
    %147 = vector.shape_cast %146 : vector<64xf32> to vector<64x1xf32>
    %148 = vector.broadcast %5 : f32 to vector<64x1xf32>
    %149 = arith.addf %147, %148 : vector<64x1xf32>
    %c0_59 = arith.constant 0 : index
    %c0_60 = arith.constant 0 : index
    %150 = vector.load %arg9[%c0_59, %c0_60] : memref<64x2xf32, #tpu.memory_space<vmem>>, vector<64x1xf32>
    tpu.vector_store %arg9[%c0_59, %c0_60], %149 {strides = array<i32>} : memref<64x2xf32, #tpu.memory_space<vmem>>, vector<64x1xf32>,
    %cst_61 = arith.constant dense<0.000000e+00> : vector<64x8xf32>
    %151 = tpu.matmul %85, %13, %cst_61 {dimension_numbers = #tpu.dot_dimension_numbers<[1], [0], [0], [1], [0, 0, 1, 1], [], []>} : vector<64x8xf32>, vector<8x8xf32>, vector<64x8xf32> -> vector<64x8xf32>
    %152 = arith.mulf %151, %126 : vector<64x8xf32>
    %cst_62 = arith.constant dense<0.000000e+00> : vector<64xf32>
    %153 = vector.multi_reduction <add>, %152, %cst_62 [1] : vector<64x8xf32> to vector<64xf32>
    %154 = vector.shape_cast %153 : vector<64xf32> to vector<64x1xf32>
    %155 = vector.broadcast %5 : f32 to vector<64x1xf32>
    %156 = arith.addf %154, %155 : vector<64x1xf32>
    %c0_63 = arith.constant 0 : index
    %c1_64 = arith.constant 1 : index
    %157 = vector.load %arg9[%c0_63, %c1_64] : memref<64x2xf32, #tpu.memory_space<vmem>>, vector<64x1xf32>
    tpu.vector_store %arg9[%c0_63, %c1_64], %156 {strides = array<i32>} : memref<64x2xf32, #tpu.memory_space<vmem>>, vector<64x1xf32>,
    return
  }
}

</mosaic_0001>

<bundles_post_ra>
// kernel: tpu_custom_call.1
= control target key start
LH: loop header
LB: loop body
LE: loop exit
PB: predicated region body
PF: predicated region fallthrough
CT: control target
= control target key end

     0   :  { %vm69_vm0 = vcmask 130048   ;;  %v3590_v19 = vmov 0.0|0.0   ;;  %vm3591_vm1 = vmmov 0   ;;  %v3592_v20 = vmov 0.0   ;;  %s4607_s2 = inlined_call_operand.vmem [shape: f32[18,32], index: 2, kind: input, shape index: {}]   ;;  %s4608_s0 = inlined_call_operand.vmem [shape: f32[128,16], index: 0, kind: input, shape index: {}]   ;;  %s4609_s1 = inlined_call_operand.vmem [shape: f32[64,64], index: 1, kind: input, shape index: {}]   ;;  %s4610_s3 = inlined_call_operand.vmem [shape: f32[64,16], index: 3, kind: input, shape index: {}]   ;;  %s4611_s4 = inlined_call_operand.vmem [shape: f32[24,32], index: 4, kind: input, shape index: {}]   ;;  %s4612_s6 = inlined_call_operand.vmem [shape: f32[64,8], index: 6, kind: output, shape index: {0}]   ;;  %s4613_s7 = inlined_call_operand.vmem [shape: f32[64,16], index: 7, kind: output, shape index: {1}]   ;;  %s4614_s10 = inlined_call_operand.vmem [shape: f32[64,8], index: 10, kind: output, shape index: {4}]   ;;  %s4615_s5 = inlined_call_operand.<no memory space> [shape: f32[1,1], index: 5, kind: input, shape index: {}]   ;;  %s4616_s8 = inlined_call_operand.vmem [shape: f32[64,2], index: 8, kind: output, shape index: {2}]   ;;  %s4617_s9 = inlined_call_operand.vmem [shape: f32[64,2], index: 9, kind: output, shape index: {3}]  }
   0x1   :  { %v54_v0 = vld [vmem:[%s4607_s2] sm:$0xff]  ;;  %v55_v1 = vld [vmem:[%s4607_s2 + $0x8] sm:$0xff]  ;;  %v32_v5 = vld [vmem:[%s4608_s0 + $0x10] sm:$0xff]  ;;  %3255 = vmatprep.subr.bf16.mxu1 %v3590_v19  ;;  %3029 = vmatprep.mubr.msk.f32.mxu1 %vm3591_vm1, %v3592_v20  ;;  %v263_v21 = vlaneseq  ;;  %vm283_vm2 = vcmask 261120   ;;  %vm607_vm4 = vcmask 523264   ;;  %vm1211_vm13 = vcmask 64512  }
   0x2   :  { %v3251_v2 = vpack.c.bf16 %v55_v1, %v54_v0  ;;  %v30_v3 = vld [vmem:[%s4608_s0] sm:$0xff]  ;;  %v31_v4 = vld [vmem:[%s4608_s0 + $0x8] sm:$0xff]  ;;  %v33_v6 = vld [vmem:[%s4608_s0 + $0x18] sm:$0xff] }
   0x3   :  { %2989 = vmatprep.mubr.msk.f32.mxu0 %vm69_vm0, %v30_v3  ;;  %v34_v7 = vld [vmem:[%s4608_s0 + $0x20] sm:$0xff]  ;;  %v35_v8 = vld [vmem:[%s4608_s0 + $0x28] sm:$0xff]  ;;  %v36_v9 = vld [vmem:[%s4608_s0 + $0x30] sm:$0xff]  ;;  %v3720_v22 = vshrl.u32 %v263_v21, 7 }
   0x4   :  { %3252 = vmatprep.subr.bf16.mxu0 %v3251_v2  ;;  %v37_v10 = vld [vmem:[%s4608_s0 + $0x38] sm:$0xff]  ;;  %v38_v11 = vld [vmem:[%s4608_s0 + $0x40] sm:$0xff]  ;;  %v39_v12 = vld [vmem:[%s4608_s0 + $0x48] sm:$0xff] }
   0x5   :  { %3254 = vmatpush3.bf16.msra.mxu0 %v3251_v2  ;;  %v40_v13 = vld [vmem:[%s4608_s0 + $0x50] sm:$0xff]  ;;  %v41_v14 = vld [vmem:[%s4608_s0 + $0x58] sm:$0xff]  ;;  %v42_v15 = vld [vmem:[%s4608_s0 + $0x60] sm:$0xff]  ;;  %v265_v23 = vsub.s32 1, %v3720_v22 }
   0x6   :  { %v43_v16 = vld [vmem:[%s4608_s0 + $0x68] sm:$0xff]  ;;  %v44_v17 = vld [vmem:[%s4608_s0 + $0x70] sm:$0xff]  ;;  %v45_v18 = vld [vmem:[%s4608_s0 + $0x78] sm:$0xff]  ;;  %3271 = vmatprep.subr.bf16.mxu0 %v3590_v19 }
   0x7   :  { %v3726_v24 = vld [vmem:[%s4607_s2 + $0x10] sm:$0x3]  ;;  %vm3733_vm3 = vmpackc.low %vm283_vm2, %vm283_vm2 }
   0x8   :  { %2990 = vmatmul.mubr.msk.f32.vlgmr.msra.gmra.mrb[0].mxu0 %vm69_vm0, %v31_v4  ;;  %v3729_v25 = vrot.slane %v3726_v24, %v265_v23 }
   0x9   :  { %2992 = vmatprep.mubr.msk.f32.mxu0 %vm69_vm0, %v32_v5 }
   0xc   :  { %2993 = vmatmul.mubr.msk.f32.gmra.mrb[2].mxu0 %vm69_vm0, %v33_v6 }
   0xd   :  { %2995 = vmatprep.mubr.msk.f32.mxu0 %vm69_vm0, %v34_v7 }
  0x10   :  { %2996 = vmatmul.mubr.msk.f32.gmra.mrb[4].mxu0 %vm69_vm0, %v35_v8 }
  0x11   :  { %2998 = vmatprep.mubr.msk.f32.mxu0 %vm69_vm0, %v36_v9 }
  0x14   :  { %2999 = vmatmul.mubr.msk.f32.gmra.mrb[6].mxu0 %vm69_vm0, %v37_v10 }
  0x15   :  { %3001 = vmatprep.mubr.msk.f32.mxu0 %vm69_vm0, %v38_v11 }
  0x18   :  { %3002 = vmatmul.mubr.msk.f32.gmra.mrb[8].mxu0 %vm69_vm0, %v39_v12 }
  0x19   :  { %3004 = vmatprep.mubr.msk.f32.mxu0 %vm69_vm0, %v40_v13 }
  0x1c   :  { %3005 = vmatmul.mubr.msk.f32.gmra.mrb[10].mxu0 %vm69_vm0, %v41_v14 }
  0x1d   :  { %3007 = vmatprep.mubr.msk.f32.mxu0 %vm69_vm0, %v42_v15  ;;  %v525_v15 = vsub.s32 0, %v3720_v22 }
  0x20   :  { %3008 = vmatmul.mubr.msk.f32.gmra.mrb[12].mxu0 %vm69_vm0, %v43_v16 }
  0x21   :  { %3010 = vmatprep.mubr.msk.f32.mxu0 %vm69_vm0, %v44_v17 }
  0x24   :  { %3011 = vmatmul.mubr.msk.f32.gmra.mrb[14].mxu0 %vm69_vm0, %v45_v18 }
  0x25   :  { %3048 = vmatprep.mubr.msk.f32.mxu0 %vm3591_vm1, %v3592_v20 }
  0xdb   :  { %v2991_v26 = vpop.f32.mrb[0].mxu0 }
  0xdc   :  { %v184_v27 = vpop.f32.mrb[1].mxu0  ;;  %v268_v31 = vmul.f32 %v2991_v26, %v3729_v25 }
  0xdd   :  { %v3256_v29 = vpack.c.bf16 %v2991_v26, %v184_v27  ;;  %v267_v30 = vmul.f32 %v3729_v25, %v184_v27 }
  0xde   :  { %v287_v39 = vsel %vm283_vm2, %v268_v31, 0.0 }
  0xdf   :  { %v2994_v32 = vpop.f32.mrb[2].mxu0  ;;  %3258 = vmatpush3.bf16.xpose.msk.msra.mxu1 %vm3733_vm3, %v3256_v29  ;;  %v284_v33 = vsel %vm283_vm2, %v267_v30, 0.0 }
  0xe0   :  { %285 = vadd.xlane.f32.xlu0 %v284_v33  ;;  %v270_v34 = vmul.f32 %v2994_v32, %v3729_v25  ;;  %v194_v35 = vpop.f32.mrb[3].mxu0  ;;  %3259 = vmatprep.subr.bf16.mxu1 %v3590_v19 }
  0xe1   :  { %v269_v36 = vmul.f32 %v3729_v25, %v194_v35  ;;  %v3260_v37 = vpack.c.bf16 %v2994_v32, %v194_v35 }
  0xe2   :  { %v293_v38 = vsel %vm283_vm2, %v270_v34, 0.0 }
  0xe3   :  { %294 = vadd.xlane.f32.xlu1 %v293_v38  ;;  %v2997_v40 = vpop.f32.mrb[4].mxu0  ;;  %v290_v41 = vsel %vm283_vm2, %v269_v36, 0.0 }
  0xe4   :  { %288 = vadd.xlane.f32.xlu0 %v287_v39  ;;  %v272_v42 = vmul.f32 %v2997_v40, %v3729_v25  ;;  %v204_v43 = vpop.f32.mrb[5].mxu0 }
  0xe5   :  { %v271_v44 = vmul.f32 %v3729_v25, %v204_v43  ;;  %v3264_v45 = vpack.c.bf16 %v2997_v40, %v204_v43 }
  0xe6   :  { %v299_v48 = vsel %vm283_vm2, %v272_v42, 0.0 }
  0xe7   :  { %3262 = vmatpush3.bf16.xpose.msk.msra.mxu1 %vm3733_vm3, %v3260_v37  ;;  %291 = vadd.xlane.f32.xlu1 %v290_v41  ;;  %v296_v46 = vsel %vm283_vm2, %v271_v44, 0.0  ;;  %v3000_v47 = vpop.f32.mrb[6].mxu0 }
  0xe8   :  { %3263 = vmatprep.subr.bf16.mxu1 %v3590_v19  ;;  %297 = vadd.xlane.f32.xlu0 %v296_v46  ;;  %v274_v49 = vmul.f32 %v3000_v47, %v3729_v25  ;;  %v214_v50 = vpop.f32.mrb[7].mxu0 }
  0xe9   :  { %v273_v51 = vmul.f32 %v3729_v25, %v214_v50  ;;  %v3268_v52 = vpack.c.bf16 %v3000_v47, %v214_v50 }
  0xea   :  { %v305_v54 = vsel %vm283_vm2, %v274_v49, 0.0 }
  0xeb   :  { %300 = vadd.xlane.f32.xlu1 %v299_v48  ;;  %v302_v53 = vsel %vm283_vm2, %v273_v51, 0.0  ;;  %v3003_v55 = vpop.f32.mrb[8].mxu0 }
  0xec   :  { %303 = vadd.xlane.f32.xlu0 %v302_v53  ;;  %v3765_v56 = vmul.f32 %v3003_v55, %v3729_v25  ;;  %v224_v57 = vpop.f32.mrb[9].mxu0 }
  0xed   :  { %v3770_v58 = vmul.f32 %v3729_v25, %v224_v57  ;;  %v3272_v59 = vpack.c.bf16 %v3003_v55, %v224_v57 }
  0xef   :  { %3266 = vmatpush3.bf16.xpose.msk.msra.mxu1 %vm3733_vm3, %v3264_v45  ;;  %306 = vadd.xlane.f32.xlu1 %v305_v54  ;;  %v3006_v60 = vpop.f32.mrb[10].mxu0 }
  0xf0   :  { %3267 = vmatprep.subr.bf16.mxu1 %v3590_v19  ;;  %v3773_v61 = vmul.f32 %v3006_v60, %v3729_v25  ;;  %v234_v62 = vpop.f32.mrb[11].mxu0  ;;  %3274 = vmatpush3.bf16.xpose.msk.msra.mxu0 %vm3733_vm3, %v3272_v59 }
  0xf1   :  { %v3778_v63 = vmul.f32 %v3729_v25, %v234_v62  ;;  %v3276_v0 = vpack.c.bf16 %v3006_v60, %v234_v62  ;;  %3275 = vmatprep.subr.bf16.mxu0 %v3590_v19 }
  0xf3   :  { %v3009_v1 = vpop.f32.mrb[12].mxu0 }
  0xf4   :  { %v3782_v2 = vmul.f32 %v3009_v1, %v3729_v25  ;;  %v244_v3 = vpop.f32.mrb[13].mxu0 }
  0xf5   :  { %v3785_v4 = vmul.f32 %v3729_v25, %v244_v3  ;;  %v3280_v5 = vpack.c.bf16 %v3009_v1, %v244_v3 }
  0xf7   :  { %3270 = vmatpush3.bf16.xpose.msk.msra.mxu1 %vm3733_vm3, %v3268_v52  ;;  %v3012_v6 = vpop.f32.mrb[14].mxu0 }
  0xf8   :  { %3051 = vmatprep.subr.bf16.mxu1 %v3256_v29  ;;  %v3788_v7 = vmul.f32 %v3012_v6, %v3729_v25  ;;  %v254_v8 = vpop.f32.mrb[15].mxu0  ;;  %3278 = vmatpush3.bf16.xpose.msk.msra.mxu0 %vm3733_vm3, %v3276_v0 }
  0xf9   :  { %v3791_v9 = vmul.f32 %v3729_v25, %v254_v8  ;;  %v3284_v10 = vpack.c.bf16 %v3012_v6, %v254_v8  ;;  %3279 = vmatprep.subr.bf16.mxu0 %v3590_v19 }
  0xfe   :  { %3030 = vmatmul.mubr.msk.f32.vlgmr.msra.gmra.mrb[0].mxu1 %vm283_vm2, %v3726_v24 }
  0xff   :  { %3052 = vmatpush3.bf16.msra.mxu1 %v3256_v29 }
 0x100   :  { %3053 = vmatprep.subr.bf16.mxu1 %v3260_v37  ;;  %3282 = vmatpush3.bf16.xpose.msk.msra.mxu0 %vm3733_vm3, %v3280_v5 }
 0x101   :  { %3283 = vmatprep.subr.bf16.mxu0 %v3590_v19 }
 0x103   :  { %3054 = vmatpush3.bf16.msra.mxu1 %v3260_v37 }
 0x104   :  { %3055 = vmatprep.subr.bf16.mxu1 %v3264_v45 }
 0x107   :  { %3056 = vmatpush3.bf16.msra.mxu1 %v3264_v45 }
 0x108   :  { %3057 = vmatprep.subr.bf16.mxu1 %v3268_v52  ;;  %3286 = vmatpush3.bf16.xpose.msk.msra.mxu0 %vm3733_vm3, %v3284_v10 }
 0x109   :  { %3067 = vmatprep.subr.bf16.mxu0 %v3272_v59 }
 0x10b   :  { %3058 = vmatpush3.bf16.msra.mxu1 %v3268_v52 }
 0x10f   :  { %3049 = vmatmul.mubr.msk.f32.vlgmr.msra.gmra.mrb[16].mxu0 %vm283_vm2, %v3726_v24 }
 0x110   :  { %3068 = vmatpush3.bf16.msra.mxu0 %v3272_v59 }
 0x111   :  { %3069 = vmatprep.subr.bf16.mxu0 %v3276_v0 }
 0x114   :  { %3070 = vmatpush3.bf16.msra.mxu0 %v3276_v0 }
 0x115   :  { %3071 = vmatprep.subr.bf16.mxu0 %v3280_v5 }
 0x118   :  { %3072 = vmatpush3.bf16.msra.mxu0 %v3280_v5 }
 0x119   :  { %3073 = vmatprep.subr.bf16.mxu0 %v3284_v10 }
 0x11c   :  { %3074 = vmatpush3.bf16.msra.mxu0 %v3284_v10 }
 0x16d   :  { %v286_v12 = vpop.xlane.xlu0 %285 }
 0x170   :  { %v295_v11 = vpop.xlane.xlu1 %294 }
 0x171   :  { %v289_v14 = vpop.xlane.xlu0 %288 }
 0x174   :  { %v292_v13 = vpop.xlane.xlu1 %291 }
 0x175   :  { %v298_v18 = vpop.xlane.xlu0 %297 }
 0x178   :  { %v301_v16 = vpop.xlane.xlu1 %300 }
 0x179   :  { %v304_v29 = vpop.xlane.xlu0 %303 }
 0x17c   :  { %v307_v26 = vpop.xlane.xlu1 %306 }
 0x1d1   :  { %v425_v17 = vpop.f32.mrb[0].mxu1 }
 0x1d2   :  { %v526_v19 = vrot.slane %v425_v17, %v525_v15  ;;  %v3031_v20 = vpop.f32.mrb[1].mxu1  ;;  %v3809_v17 = vld [vmem:[%s4609_s1 + $0x8] sm:$0xff] }
 0x1d3   :  { %v3819_v20 = vld [vmem:[%s4609_s1 + $0x18] sm:$0xff] }
 0x1d4   :  { %v528_v21 = vadd.f32 %v526_v19, %v289_v14  ;;  %v527_v23 = vadd.f32 %v526_v19, %v286_v12  ;;  %v530_v24 = vadd.f32 %v526_v19, %v295_v11  ;;  %v529_v25 = vadd.f32 %v526_v19, %v292_v13 }
 0x1d5   :  { %v532_v27 = vadd.f32 %v526_v19, %v301_v16  ;;  %v531_v28 = vadd.f32 %v526_v19, %v298_v18  ;;  %v534_v33 = vadd.f32 %v526_v19, %v307_v26  ;;  %v533_v35 = vadd.f32 %v526_v19, %v304_v29  ;;  %v3814_v18 = vld [vmem:[%s4609_s1] sm:$0xff] }
 0x1d6   :  { %v2702_v30 = vmul.f32 -1.442695, %v528_v21  ;;  %v2701_v31 = vmul.f32 -1.442695, %v527_v23  ;;  %v2704_v32 = vmul.f32 -1.442695, %v530_v24 }
 0x1d7   :  { %v2703_v34 = vmul.f32 -1.442695, %v529_v25  ;;  %v2706_v36 = vmul.f32 -1.442695, %v532_v27  ;;  %v2705_v37 = vmul.f32 -1.442695, %v531_v28 }
 0x1d8   :  { %3310 = vpow2.f32 %v2702_v30  ;;  %v2708_v38 = vmul.f32 -1.442695, %v534_v33  ;;  %v2707_v39 = vmul.f32 -1.442695, %v533_v35  ;;  %v3827_v24 = vld [vmem:[%s4609_s1 + $0x10] sm:$0xff]  ;;  %v3845_v33 = vld [vmem:[%s4609_s1 + $0x28] sm:$0xff] }
 0x1d9   :  { %3312 = vpow2.f32 %v2701_v31  ;;  %v3850_v35 = vld [vmem:[%s4609_s1 + $0x20] sm:$0xff] }
 0x1da   :  { %3314 = vpow2.f32 %v2704_v32 }
 0x1db   :  { %3316 = vpow2.f32 %v2703_v34 }
 0x1dc   :  { %3318 = vpow2.f32 %v2706_v36 }
 0x1dd   :  { %3320 = vpow2.f32 %v2705_v37 }
 0x1de   :  { %3322 = vpow2.f32 %v2708_v38 }
 0x1df   :  { %3324 = vpow2.f32 %v2707_v39 }
 0x1e2   :  { %v3311_v40 = vpop.eup %3310 }
 0x1e3   :  { %v3313_v41 = vpop.eup %3312  ;;  %v560_v42 = vadd.f32 1.0, %v3311_v40 }
 0x1e4   :  { %v3315_v43 = vpop.eup %3314  ;;  %v559_v44 = vadd.f32 1.0, %v3313_v41  ;;  %v3865_v41 = vld [vmem:[%s4609_s1 + $0x38] sm:$0xff] }
 0x1e5   :  { %v3317_v45 = vpop.eup %3316  ;;  %3326 = vrcp.f32 %v560_v42  ;;  %v562_v46 = vadd.f32 1.0, %v3315_v43  ;;  %v3870_v43 = vld [vmem:[%s4609_s1 + $0x30] sm:$0xff] }
 0x1e6   :  { %v3319_v47 = vpop.eup %3318  ;;  %3328 = vrcp.f32 %v559_v44  ;;  %v561_v48 = vadd.f32 1.0, %v3317_v45 }
 0x1e7   :  { %v3321_v49 = vpop.eup %3320  ;;  %3330 = vrcp.f32 %v562_v46  ;;  %v564_v50 = vadd.f32 1.0, %v3319_v47 }
 0x1e8   :  { %v3323_v51 = vpop.eup %3322  ;;  %3332 = vrcp.f32 %v561_v48  ;;  %v563_v52 = vadd.f32 1.0, %v3321_v49 }
 0x1e9   :  { %v3325_v53 = vpop.eup %3324  ;;  %3334 = vrcp.f32 %v564_v50  ;;  %v566_v54 = vadd.f32 1.0, %v3323_v51  ;;  %v311_v50 = vsel %vm283_vm2, %v3765_v56, 0.0  ;;  %v308_v51 = vsel %vm283_vm2, %v3770_v58, 0.0 }
 0x1ea   :  { %3336 = vrcp.f32 %v563_v52  ;;  %v565_v55 = vadd.f32 1.0, %v3325_v53  ;;  %v317_v52 = vsel %vm283_vm2, %v3773_v61, 0.0  ;;  %v314_v53 = vsel %vm283_vm2, %v3778_v63, 0.0 }
 0x1eb   :  { %3338 = vrcp.f32 %v566_v54  ;;  %v323_v54 = vsel %vm283_vm2, %v3782_v2, 0.0  ;;  %v320_v56 = vsel %vm283_vm2, %v3785_v4, 0.0  ;;  %v329_v58 = vsel %vm283_vm2, %v3788_v7, 0.0 }
 0x1ec   :  { %3340 = vrcp.f32 %v565_v55  ;;  %v326_v61 = vsel %vm283_vm2, %v3791_v9, 0.0  ;;  %v519_v55 = vpop.f32.mrb[16].mxu0 }
 0x1ef   :  { %v3327_v57 = vpop.eup %3326 }
 0x1f0   :  { %v3329_v59 = vpop.eup %3328  ;;  %v585_v60 = vmul.f32 1.442695, %v3327_v57  ;;  %v3050_v57 = vpop.f32.mrb[17].mxu0 }
 0x1f1   :  { %v3331_v62 = vpop.eup %3330  ;;  %v583_v0 = vmul.f32 1.442695, %v3329_v59 }
 0x1f2   :  { %v3333_v1 = vpop.eup %3332  ;;  %3342 = vpow2.f32 %v585_v60  ;;  %v589_v3 = vmul.f32 1.442695, %v3331_v62 }
 0x1f3   :  { %v3335_v5 = vpop.eup %3334  ;;  %3344 = vpow2.f32 %v583_v0  ;;  %v587_v6 = vmul.f32 1.442695, %v3333_v1 }
 0x1f4   :  { %v3337_v8 = vpop.eup %3336  ;;  %3346 = vpow2.f32 %v589_v3  ;;  %v593_v10 = vmul.f32 1.442695, %v3335_v5 }
 0x1f5   :  { %v3339_v11 = vpop.eup %3338  ;;  %3348 = vpow2.f32 %v587_v6  ;;  %v591_v12 = vmul.f32 1.442695, %v3337_v8 }
 0x1f6   :  { %v3341_v13 = vpop.eup %3340  ;;  %3350 = vpow2.f32 %v593_v10  ;;  %v597_v14 = vmul.f32 1.442695, %v3339_v11 }
 0x1f7   :  { %3352 = vpow2.f32 %v591_v12  ;;  %v595_v16 = vmul.f32 1.442695, %v3341_v13  ;;  %v667_v12 = vrot.slane %v519_v55, %v525_v15 }
 0x1f8   :  { %3354 = vpow2.f32 %v597_v14 }
 0x1f9   :  { %3356 = vpow2.f32 %v595_v16 }
 0x1fc   :  { %v3343_v19 = vpop.eup %3342 }
 0x1fd   :  { %v3345_v21 = vpop.eup %3344  ;;  %v3822_v23 = vmul.f32 %v3343_v19, %v3809_v17 }
 0x1fe   :  { %v3347_v25 = vpop.eup %3346  ;;  %v3830_v26 = vmul.f32 %v3345_v21, %v3814_v18 }
 0x1ff   :  { %v3349_v27 = vpop.eup %3348  ;;  %v611_v28 = vsel %vm607_vm4, %v3822_v23, 0.0  ;;  %v3835_v29 = vmul.f32 %v3347_v25, %v3819_v20 }
 0x200   :  { %v3351_v30 = vpop.eup %3350  ;;  %612 = vadd.xlane.f32.xlu1 %v611_v28  ;;  %v608_v31 = vsel %vm607_vm4, %v3830_v26, 0.0  ;;  %v3840_v32 = vmul.f32 %v3349_v27, %v3827_v24 }
 0x201   :  { %v3353_v34 = vpop.eup %3352  ;;  %609 = vadd.xlane.f32.xlu0 %v608_v31  ;;  %v617_v36 = vsel %vm607_vm4, %v3835_v29, 0.0  ;;  %v3855_v37 = vmul.f32 %v3351_v30, %v3845_v33 }
 0x202   :  { %v3355_v38 = vpop.eup %3354  ;;  %v614_v39 = vsel %vm607_vm4, %v3840_v32, 0.0  ;;  %v3860_v40 = vmul.f32 %v3353_v34, %v3850_v35 }
 0x203   :  { %v3357_v42 = vpop.eup %3356  ;;  %v623_v44 = vsel %vm607_vm4, %v3855_v37, 0.0  ;;  %v3875_v45 = vmul.f32 %v3355_v38, %v3865_v41 }
 0x204   :  { %618 = vadd.xlane.f32.xlu1 %v617_v36  ;;  %v620_v46 = vsel %vm607_vm4, %v3860_v40, 0.0  ;;  %v3880_v47 = vmul.f32 %v3357_v42, %v3870_v43 }
 0x205   :  { %615 = vadd.xlane.f32.xlu0 %v614_v39  ;;  %v629_v48 = vsel %vm607_vm4, %v3875_v45, 0.0 }
 0x206   :  { %v626_v49 = vsel %vm607_vm4, %v3880_v47, 0.0 }
 0x208   :  { %624 = vadd.xlane.f32.xlu1 %v623_v44 }
 0x209   :  { %621 = vadd.xlane.f32.xlu0 %v620_v46 }
 0x20c   :  { %630 = vadd.xlane.f32.xlu1 %v629_v48 }
 0x20d   :  { %627 = vadd.xlane.f32.xlu0 %v626_v49 }
 0x210   :  { %312 = vadd.xlane.f32.xlu1 %v311_v50 }
 0x211   :  { %309 = vadd.xlane.f32.xlu0 %v308_v51 }
 0x214   :  { %318 = vadd.xlane.f32.xlu1 %v317_v52 }
 0x215   :  { %315 = vadd.xlane.f32.xlu0 %v314_v53 }
 0x218   :  { %324 = vadd.xlane.f32.xlu1 %v323_v54 }
 0x219   :  { %321 = vadd.xlane.f32.xlu0 %v320_v56 }
 0x21c   :  { %330 = vadd.xlane.f32.xlu1 %v329_v58 }
 0x21d   :  { %327 = vadd.xlane.f32.xlu0 %v326_v61 }
 0x28d   :  { %v613_v63 = vpop.xlane.xlu1 %612 }
 0x28e   :  { %v633_v59 = vmax.f32 %v613_v63, 1e-30  ;;  %v610_v60 = vpop.xlane.xlu0 %609 }
 0x28f   :  { %v632_v62 = vmax.f32 %v610_v60, 1e-30 }
 0x290   :  { %3358 = vrcp.f32 %v633_v59 }
 0x291   :  { %3360 = vrcp.f32 %v632_v62  ;;  %v619_v2 = vpop.xlane.xlu1 %618 }
 0x292   :  { %v635_v0 = vmax.f32 %v619_v2, 1e-30  ;;  %v616_v4 = vpop.xlane.xlu0 %615 }
 0x293   :  { %v634_v1 = vmax.f32 %v616_v4, 1e-30 }
 0x294   :  { %3362 = vrcp.f32 %v635_v0 }
 0x295   :  { %3364 = vrcp.f32 %v634_v1  ;;  %v625_v7 = vpop.xlane.xlu1 %624 }
 0x296   :  { %v637_v3 = vmax.f32 %v625_v7, 1e-30  ;;  %v622_v5 = vpop.xlane.xlu0 %621 }
 0x297   :  { %v636_v6 = vmax.f32 %v622_v5, 1e-30 }
 0x298   :  { %3366 = vrcp.f32 %v637_v3 }
 0x299   :  { %3368 = vrcp.f32 %v636_v6  ;;  %v631_v9 = vpop.xlane.xlu1 %630 }
 0x29a   :  { %v3359_v8 = vpop.eup %3358  ;;  %v639_v10 = vmax.f32 %v631_v9, 1e-30  ;;  %v628_v11 = vpop.xlane.xlu0 %627 }
 0x29b   :  { %v3361_v13 = vpop.eup %3360  ;;  %v638_v14 = vmax.f32 %v628_v11, 1e-30  ;;  %v657_v16 = vmul.f32 %v3359_v8, %v3822_v23 }
 0x29c   :  { %3370 = vrcp.f32 %v639_v10  ;;  %v656_v19 = vmul.f32 %v3361_v13, %v3830_v26 }
 0x29d   :  { %3372 = vrcp.f32 %v638_v14  ;;  %v313_v21 = vpop.xlane.xlu1 %312 }
 0x29e   :  { %v3363_v25 = vpop.eup %3362  ;;  %v669_v27 = vadd.f32 %v667_v12, %v313_v21  ;;  %v310_v28 = vpop.xlane.xlu0 %309  ;;  %v3906_v30 = vpack.c.bf16 %v657_v16, %v656_v19 }
 0x29f   :  { %v3365_v31 = vpop.eup %3364  ;;  %v659_v34 = vmul.f32 %v3363_v25, %v3835_v29  ;;  %v668_v36 = vadd.f32 %v667_v12, %v310_v28 }
 0x2a0   :  { %v658_v22 = vmul.f32 %v3365_v31, %v3840_v32  ;;  %v2710_v15 = vmul.f32 -1.442695, %v669_v27  ;;  %3059 = vmatprep.mubr.msk.bf16.mxu1 %vm607_vm4, %v3906_v30 }
 0x2a1   :  { %v2709_v23 = vmul.f32 -1.442695, %v668_v36  ;;  %v319_v38 = vpop.xlane.xlu1 %318 }
 0x2a2   :  { %v3367_v26 = vpop.eup %3366  ;;  %3374 = vpow2.f32 %v2710_v15  ;;  %v671_v39 = vadd.f32 %v667_v12, %v319_v38  ;;  %v316_v42 = vpop.xlane.xlu0 %315  ;;  %v3912_v44 = vpack.c.bf16 %v659_v34, %v658_v22 }
 0x2a3   :  { %v3369_v46 = vpop.eup %3368  ;;  %3376 = vpow2.f32 %v2709_v23  ;;  %v670_v48 = vadd.f32 %v667_v12, %v316_v42  ;;  %v661_v29 = vmul.f32 %v3367_v26, %v3855_v37 }
 0x2a4   :  { %v2712_v49 = vmul.f32 -1.442695, %v671_v39  ;;  %3060 = vmatmul.mubr.msk.bf16.vlgmr.msra.gmra.mrb[4].mxu1 %vm607_vm4, %v3912_v44  ;;  %v660_v32 = vmul.f32 %v3369_v46, %v3860_v40 }
 0x2a5   :  { %v2711_v50 = vmul.f32 -1.442695, %v670_v48  ;;  %v325_v51 = vpop.xlane.xlu1 %324 }
 0x2a6   :  { %v3371_v52 = vpop.eup %3370  ;;  %3378 = vpow2.f32 %v2712_v49  ;;  %v673_v53 = vadd.f32 %v667_v12, %v325_v51  ;;  %v322_v54 = vpop.xlane.xlu0 %321  ;;  %v3918_v56 = vpack.c.bf16 %v661_v29, %v660_v32 }
 0x2a7   :  { %v3373_v58 = vpop.eup %3372  ;;  %3380 = vpow2.f32 %v2711_v50  ;;  %v672_v61 = vadd.f32 %v667_v12, %v322_v54  ;;  %v663_v55 = vmul.f32 %v3371_v52, %v3875_v45 }
 0x2a8   :  { %v2714_v37 = vmul.f32 -1.442695, %v673_v53  ;;  %3063 = vmatprep.mubr.msk.bf16.mxu1 %vm607_vm4, %v3918_v56  ;;  %v662_v57 = vmul.f32 %v3373_v58, %v3880_v47 }
 0x2a9   :  { %v2713_v40 = vmul.f32 -1.442695, %v672_v61  ;;  %v331_v63 = vpop.xlane.xlu1 %330 }
 0x2aa   :  { %3382 = vpow2.f32 %v2714_v37  ;;  %v675_v59 = vadd.f32 %v667_v12, %v331_v63  ;;  %v328_v60 = vpop.xlane.xlu0 %327  ;;  %v3924_v62 = vpack.c.bf16 %v663_v55, %v662_v57 }
 0x2ab   :  { %3384 = vpow2.f32 %v2713_v40  ;;  %v674_v2 = vadd.f32 %v667_v12, %v328_v60 }
 0x2ac   :  { %v3375_v0 = vpop.eup %3374  ;;  %v2716_v4 = vmul.f32 -1.442695, %v675_v59  ;;  %3064 = vmatmul.mubr.msk.bf16.gmra.mrb[8].mxu1 %vm607_vm4, %v3924_v62 }
 0x2ad   :  { %v3377_v45 = vpop.eup %3376  ;;  %v701_v1 = vadd.f32 1.0, %v3375_v0  ;;  %v2715_v7 = vmul.f32 -1.442695, %v674_v2 }
 0x2ae   :  { %v700_v3 = vadd.f32 1.0, %v3377_v45  ;;  %3386 = vpow2.f32 %v2716_v4 }
 0x2af   :  { %3388 = vrcp.f32 %v701_v1 }
 0x2b0   :  { %v3379_v47 = vpop.eup %3378  ;;  %3390 = vrcp.f32 %v700_v3 }
 0x2b1   :  { %v3381_v5 = vpop.eup %3380  ;;  %v703_v6 = vadd.f32 1.0, %v3379_v47  ;;  %3392 = vpow2.f32 %v2715_v7  ;;  %v61_v47 = vld [vmem:[%s4610_s3 + $0x20] sm:$0xff] }
 0x2b2   :  { %v702_v9 = vadd.f32 1.0, %v3381_v5  ;;  %v62_v5 = vld [vmem:[%s4610_s3 + $0x28] sm:$0xff] }
 0x2b3   :  { %3394 = vrcp.f32 %v703_v6  ;;  %v3287_v6 = vpack.c.bf16 %v62_v5, %v61_v47 }
 0x2b4   :  { %v3383_v8 = vpop.eup %3382  ;;  %3396 = vrcp.f32 %v702_v9  ;;  %v63_v9 = vld [vmem:[%s4610_s3 + $0x30] sm:$0xff] }
 0x2b5   :  { %v3385_v10 = vpop.eup %3384  ;;  %v705_v11 = vadd.f32 1.0, %v3383_v8  ;;  %3288 = vmatprep.subr.bf16.mxu0 %v3287_v6  ;;  %3303 = vmatprep.subr.bf16.mxu1 %v3287_v6  ;;  %v64_v8 = vld [vmem:[%s4610_s3 + $0x38] sm:$0xff] }
 0x2b6   :  { %v704_v12 = vadd.f32 1.0, %v3385_v10  ;;  %3305 = vmatpush3.bf16.msra.mxu1 %v3287_v6  ;;  %v3291_v10 = vpack.c.bf16 %v64_v8, %v63_v9 }
 0x2b7   :  { %3398 = vrcp.f32 %v705_v11 }
 0x2b8   :  { %v3387_v13 = vpop.eup %3386  ;;  %3400 = vrcp.f32 %v704_v12  ;;  %3304 = vmatprep.subr.bf16.mxu1 %v3291_v10 }
 0x2b9   :  { %v3389_v14 = vpop.eup %3388  ;;  %v707_v16 = vadd.f32 1.0, %v3387_v13 }
 0x2ba   :  { %v3391_v19 = vpop.eup %3390  ;;  %v726_v21 = vmul.f32 1.442695, %v3389_v14  ;;  %3306 = vmatpush3.bf16.msra.mxu1 %v3291_v10 }
 0x2bb   :  { %v3393_v25 = vpop.eup %3392  ;;  %v724_v27 = vmul.f32 1.442695, %v3391_v19  ;;  %3402 = vrcp.f32 %v707_v16 }
 0x2bc   :  { %3404 = vpow2.f32 %v726_v21  ;;  %v706_v28 = vadd.f32 1.0, %v3393_v25 }
 0x2bd   :  { %v3395_v31 = vpop.eup %3394  ;;  %3406 = vpow2.f32 %v724_v27 }
 0x2be   :  { %v3397_v34 = vpop.eup %3396  ;;  %v730_v36 = vmul.f32 1.442695, %v3395_v31  ;;  %3408 = vrcp.f32 %v706_v28 }
 0x2bf   :  { %v728_v22 = vmul.f32 1.442695, %v3397_v34 }
 0x2c0   :  { %3410 = vpow2.f32 %v730_v36 }
 0x2c1   :  { %v3399_v15 = vpop.eup %3398  ;;  %3412 = vpow2.f32 %v728_v22 }
 0x2c2   :  { %v3401_v23 = vpop.eup %3400  ;;  %v734_v38 = vmul.f32 1.442695, %v3399_v15 }
 0x2c3   :  { %v732_v26 = vmul.f32 1.442695, %v3401_v23 }
 0x2c4   :  { %3414 = vpow2.f32 %v734_v38 }
 0x2c5   :  { %v3403_v39 = vpop.eup %3402  ;;  %3416 = vpow2.f32 %v732_v26 }
 0x2c6   :  { %v3405_v42 = vpop.eup %3404  ;;  %v738_v46 = vmul.f32 1.442695, %v3403_v39 }
 0x2c7   :  { %v3407_v48 = vpop.eup %3406  ;;  %v3929_v29 = vmul.f32 %v3405_v42, %v3809_v17 }
 0x2c8   :  { %v3409_v49 = vpop.eup %3408  ;;  %3418 = vpow2.f32 %v738_v46  ;;  %v3932_v32 = vmul.f32 %v3407_v48, %v3814_v18 }
 0x2c9   :  { %v736_v50 = vmul.f32 1.442695, %v3409_v49  ;;  %v751_v51 = vsel %vm607_vm4, %v3929_v29, 0.0 }
 0x2ca   :  { %v3411_v52 = vpop.eup %3410  ;;  %752 = vadd.xlane.f32.xlu1 %v751_v51  ;;  %v748_v53 = vsel %vm607_vm4, %v3932_v32, 0.0 }
 0x2cb   :  { %v3413_v54 = vpop.eup %3412  ;;  %3420 = vpow2.f32 %v736_v50  ;;  %749 = vadd.xlane.f32.xlu0 %v748_v53  ;;  %v3939_v58 = vmul.f32 %v3411_v52, %v3819_v20 }
 0x2cc   :  { %v3942_v61 = vmul.f32 %v3413_v54, %v3827_v24 }
 0x2cd   :  { %v757_v55 = vsel %vm607_vm4, %v3939_v58, 0.0 }
 0x2ce   :  { %v3415_v37 = vpop.eup %3414  ;;  %758 = vadd.xlane.f32.xlu1 %v757_v55  ;;  %v754_v57 = vsel %vm607_vm4, %v3942_v61, 0.0 }
 0x2cf   :  { %v3417_v40 = vpop.eup %3416  ;;  %755 = vadd.xlane.f32.xlu0 %v754_v57  ;;  %v3949_v63 = vmul.f32 %v3415_v37, %v3845_v33 }
 0x2d0   :  { %v3952_v59 = vmul.f32 %v3417_v40, %v3850_v35 }
 0x2d1   :  { %v763_v60 = vsel %vm607_vm4, %v3949_v63, 0.0 }
 0x2d2   :  { %v3419_v2 = vpop.eup %3418  ;;  %764 = vadd.xlane.f32.xlu1 %v763_v60  ;;  %v760_v0 = vsel %vm607_vm4, %v3952_v59, 0.0 }
 0x2d3   :  { %761 = vadd.xlane.f32.xlu0 %v760_v0  ;;  %v3959_v4 = vmul.f32 %v3419_v2, %v3865_v41 }
 0x2d5   :  { %v3421_v45 = vpop.eup %3420  ;;  %v769_v1 = vsel %vm607_vm4, %v3959_v4, 0.0 }
 0x2d6   :  { %770 = vadd.xlane.f32.xlu1 %v769_v1  ;;  %v3964_v7 = vmul.f32 %v3421_v45, %v3870_v43 }
 0x2d8   :  { %v766_v3 = vsel %vm607_vm4, %v3964_v7, 0.0 }
 0x2d9   :  { %767 = vadd.xlane.f32.xlu0 %v766_v3 }
 0x357   :  { %v753_v11 = vpop.xlane.xlu1 %752 }
 0x358   :  { %v773_v12 = vmax.f32 %v753_v11, 1e-30  ;;  %v750_v13 = vpop.xlane.xlu0 %749 }
 0x359   :  { %v772_v14 = vmax.f32 %v750_v13, 1e-30 }
 0x35a   :  { %3422 = vrcp.f32 %v773_v12 }
 0x35b   :  { %3424 = vrcp.f32 %v772_v14  ;;  %v759_v16 = vpop.xlane.xlu1 %758 }
 0x35c   :  { %v775_v19 = vmax.f32 %v759_v16, 1e-30  ;;  %v756_v21 = vpop.xlane.xlu0 %755 }
 0x35d   :  { %v774_v25 = vmax.f32 %v756_v21, 1e-30 }
 0x35e   :  { %3426 = vrcp.f32 %v775_v19 }
 0x35f   :  { %3428 = vrcp.f32 %v774_v25  ;;  %v765_v27 = vpop.xlane.xlu1 %764 }
 0x360   :  { %v777_v28 = vmax.f32 %v765_v27, 1e-30  ;;  %v762_v31 = vpop.xlane.xlu0 %761 }
 0x361   :  { %v776_v34 = vmax.f32 %v762_v31, 1e-30 }
 0x362   :  { %3430 = vrcp.f32 %v777_v28 }
 0x363   :  { %3432 = vrcp.f32 %v776_v34  ;;  %v771_v36 = vpop.xlane.xlu1 %770 }
 0x364   :  { %v3423_v22 = vpop.eup %3422  ;;  %v779_v15 = vmax.f32 %v771_v36, 1e-30 }
 0x365   :  { %v3425_v23 = vpop.eup %3424  ;;  %v797_v38 = vmul.f32 %v3423_v22, %v3929_v29 }
 0x366   :  { %3434 = vrcp.f32 %v779_v15  ;;  %v768_v26 = vpop.xlane.xlu0 %767  ;;  %v796_v39 = vmul.f32 %v3425_v23, %v3932_v32 }
 0x367   :  { %v778_v42 = vmax.f32 %v768_v26, 1e-30 }
 0x368   :  { %v3427_v46 = vpop.eup %3426  ;;  %v933_v48 = vpack.c.bf16 %v797_v38, %v796_v39 }
 0x369   :  { %v3429_v49 = vpop.eup %3428  ;;  %v799_v50 = vmul.f32 %v3427_v46, %v3939_v58  ;;  %3436 = vrcp.f32 %v778_v42 }
 0x36a   :  { %v798_v51 = vmul.f32 %v3429_v49, %v3942_v61  ;;  %3075 = vmatprep.mubr.msk.bf16.mxu0 %vm607_vm4, %v933_v48 }
 0x36c   :  { %v3431_v52 = vpop.eup %3430  ;;  %v934_v53 = vpack.c.bf16 %v799_v50, %v798_v51  ;;  %v65_v51 = vld [vmem:[%s4611_s4] sm:$0xff] }
 0x36d   :  { %v3433_v54 = vpop.eup %3432  ;;  %v801_v29 = vmul.f32 %v3431_v52, %v3949_v63 }
 0x36e   :  { %3076 = vmatmul.mubr.msk.bf16.vlgmr.msra.gmra.mrb[20].mxu0 %vm607_vm4, %v934_v53  ;;  %v800_v32 = vmul.f32 %v3433_v54, %v3952_v59 }
 0x36f   :  { %3290 = vmatpush3.bf16.msra.mxu0 %v3287_v6 }
 0x370   :  { %v3435_v55 = vpop.eup %3434  ;;  %v935_v37 = vpack.c.bf16 %v801_v29, %v800_v32  ;;  %3292 = vmatprep.subr.bf16.mxu0 %v3291_v10 }
 0x371   :  { %v803_v58 = vmul.f32 %v3435_v55, %v3959_v4 }
 0x372   :  { %3079 = vmatprep.mubr.msk.bf16.mxu0 %vm607_vm4, %v935_v37 }
 0x373   :  { %v3437_v61 = vpop.eup %3436  ;;  %3294 = vmatpush3.bf16.msra.mxu0 %v3291_v10 }
 0x374   :  { %v802_v57 = vmul.f32 %v3437_v61, %v3964_v7  ;;  %3115 = vmatprep.subr.mxu0 %v65_v51 }
 0x376   :  { %v936_v40 = vpack.c.bf16 %v803_v58, %v802_v57 }
 0x377   :  { %v3061_v60 = vpop.f32.mrb[4].mxu1 }
 0x378   :  { %3080 = vmatmul.mubr.msk.bf16.gmra.mrb[24].mxu0 %vm607_vm4, %v936_v40  ;;  %v905_v63 = vmul.f32 1.442695, %v3061_v60  ;;  %v862_v2 = vpop.f32.mrb[5].mxu1  ;;  %vm895_vm5 = vcmp.gt.f32.partialorder %v3061_v60, 0.0 }
 0x379   :  { %v901_v0 = vmul.f32 1.442695, %v862_v2  ;;  %v3062_v59 = vpop.f32.mrb[6].mxu1  ;;  %vm893_vm6 = vcmp.gt.f32.partialorder %v862_v2, 0.0 }
 0x37a   :  { %3438 = vpow2.f32 %v905_v63  ;;  %v907_v45 = vmul.f32 1.442695, %v3062_v59  ;;  %v865_v1 = vpop.f32.mrb[7].mxu1  ;;  %vm896_vm7 = vcmp.gt.f32.partialorder %v3062_v59, 0.0 }
 0x37b   :  { %3440 = vpow2.f32 %v901_v0  ;;  %v903_v3 = vmul.f32 1.442695, %v865_v1  ;;  %vm894_vm8 = vcmp.gt.f32.partialorder %v865_v1, 0.0 }
 0x37c   :  { %3442 = vpow2.f32 %v907_v45  ;;  %v57_v45 = vld [vmem:[%s4610_s3] sm:$0xff] }
 0x37d   :  { %3444 = vpow2.f32 %v903_v3 }
 0x37f   :  { %v3065_v4 = vpop.f32.mrb[8].mxu1 }
 0x380   :  { %v913_v47 = vmul.f32 1.442695, %v3065_v4  ;;  %v878_v5 = vpop.f32.mrb[9].mxu1  ;;  %vm899_vm11 = vcmp.gt.f32.partialorder %v3065_v4, 0.0 }
 0x381   :  { %v909_v6 = vmul.f32 1.442695, %v878_v5  ;;  %v3066_v7 = vpop.f32.mrb[10].mxu1  ;;  %vm897_vm9 = vcmp.gt.f32.partialorder %v878_v5, 0.0 }
 0x382   :  { %3446 = vpow2.f32 %v913_v47  ;;  %v915_v9 = vmul.f32 1.442695, %v3066_v7  ;;  %v881_v8 = vpop.f32.mrb[11].mxu1  ;;  %vm900_vm12 = vcmp.gt.f32.partialorder %v3066_v7, 0.0 }
 0x383   :  { %3448 = vpow2.f32 %v909_v6  ;;  %v911_v10 = vmul.f32 1.442695, %v881_v8  ;;  %vm898_vm10 = vcmp.gt.f32.partialorder %v881_v8, 0.0 }
 0x384   :  { %v3439_v11 = vpop.eup %3438  ;;  %3450 = vpow2.f32 %v915_v9 }
 0x385   :  { %v3441_v12 = vpop.eup %3440  ;;  %v2723_v13 = vadd.f32 -1.0, %v3439_v11  ;;  %3452 = vpow2.f32 %v911_v10 }
 0x386   :  { %v3443_v14 = vpop.eup %3442  ;;  %v2721_v16 = vadd.f32 -1.0, %v3441_v12 }
 0x387   :  { %v3445_v19 = vpop.eup %3444  ;;  %v2724_v21 = vadd.f32 -1.0, %v3443_v14  ;;  %v927_v25 = vsel %vm895_vm5, %v3061_v60, %v2723_v13 }
 0x388   :  { %v2722_v27 = vadd.f32 -1.0, %v3445_v19  ;;  %3094 = vmatprep.mubr.msk.f32.mxu1 %vm283_vm2, %v927_v25  ;;  %v925_v28 = vsel %vm893_vm6, %v862_v2, %v2721_v16 }
 0x389   :  { %v928_v31 = vsel %vm896_vm7, %v3062_v59, %v2724_v21  ;;  %3091 = vmatprep.mubr.msk.f32.mxu0 %vm283_vm2, %v925_v28 }
 0x38a   :  { %v926_v34 = vsel %vm894_vm8, %v865_v1, %v2722_v27  ;;  %3095 = vmatmul.mubr.msk.f32.vlgmr.msra.gmra.mrb[2].mxu1 %vm283_vm2, %v928_v31  ;;  %v58_v1 = vld [vmem:[%s4610_s3 + $0x8] sm:$0xff] }
 0x38b   :  { %3092 = vmatmul.mubr.msk.f32.vlgmr.msra.gmra.mrb[18].mxu0 %vm283_vm2, %v926_v34  ;;  %v3295_v3 = vpack.c.bf16 %v58_v1, %v57_v45  ;;  %v66_v34 = vld [vmem:[%s4611_s4 + $0x8] sm:$0xff] }
 0x38c   :  { %v3447_v36 = vpop.eup %3446  ;;  %3116 = vmatpush3.msra.mxu0 %v65_v51 }
 0x38d   :  { %v3449_v22 = vpop.eup %3448  ;;  %v2727_v26 = vadd.f32 -1.0, %v3447_v36  ;;  %3296 = vmatprep.subr.bf16.mxu1 %v3295_v3  ;;  %v4061_v36 = vld [vmem:[%s4611_s4 + $0x10] sm:$0xff] }
 0x38e   :  { %v3451_v15 = vpop.eup %3450  ;;  %v2725_v23 = vadd.f32 -1.0, %v3449_v22  ;;  %3298 = vmatpush3.bf16.msra.mxu1 %v3295_v3  ;;  %v1748_v22 = vsel %vm607_vm4, %v3814_v18, 0.0  ;;  %v1769_v18 = vsel %vm607_vm4, %v3865_v41, 0.0 }
 0x38f   :  { %v3453_v38 = vpop.eup %3452  ;;  %v2728_v46 = vadd.f32 -1.0, %v3451_v15  ;;  %v931_v49 = vsel %vm899_vm11, %v3065_v4, %v2727_v26  ;;  %v1751_v15 = vsel %vm607_vm4, %v3809_v17, 0.0  ;;  %1749 = vadd.xlane.f32.xlu0 %v1748_v22  ;;  %v1760_v26 = vsel %vm607_vm4, %v3850_v35, 0.0  ;;  %v3584_v22 = vld [vmem:[%s4609_s1 + $0x18] sm:$0xff] }
 0x390   :  { %v2726_v39 = vadd.f32 -1.0, %v3453_v38  ;;  %v929_v42 = vsel %vm897_vm9, %v878_v5, %v2725_v23  ;;  %1752 = vadd.xlane.f32.xlu1 %v1751_v15  ;;  %v1754_v23 = vsel %vm607_vm4, %v3827_v24, 0.0  ;;  %v1757_v38 = vsel %vm607_vm4, %v3819_v20, 0.0  ;;  %v3585_v15 = vld [vmem:[%s4609_s1 + $0x10] sm:$0xff] }
 0x391   :  { %3097 = vmatprep.mubr.msk.f32.mxu1 %vm283_vm2, %v929_v42  ;;  %v932_v50 = vsel %vm900_vm12, %v3066_v7, %v2728_v46  ;;  %v1766_v17 = vsel %vm607_vm4, %v3870_v43, 0.0 }
 0x392   :  { %v930_v48 = vsel %vm898_vm10, %v881_v8, %v2726_v39  ;;  %v1763_v39 = vsel %vm607_vm4, %v3845_v33, 0.0 }
 0x393   :  { %3098 = vmatmul.mubr.msk.f32.gmra.mrb[12].mxu1 %vm283_vm2, %v930_v48  ;;  %1755 = vadd.xlane.f32.xlu0 %v1754_v23  ;;  %v809_v23 = vpack.c.bf16 %v3584_v22, %v3585_v15 }
 0x394   :  { %3100 = vmatprep.mubr.msk.f32.mxu1 %vm283_vm2, %v931_v49  ;;  %1758 = vadd.xlane.f32.xlu1 %v1757_v38 }
 0x397   :  { %3101 = vmatmul.mubr.msk.f32.gmra.mrb[14].mxu1 %vm283_vm2, %v932_v50  ;;  %1761 = vadd.xlane.f32.xlu0 %v1760_v26 }
 0x398   :  { %1764 = vadd.xlane.f32.xlu1 %v1763_v39  ;;  %v3586_v39 = vld [vmem:[%s4609_s1 + $0x28] sm:$0xff] }
 0x39b   :  { %1767 = vadd.xlane.f32.xlu0 %v1766_v17  ;;  %v3587_v17 = vld [vmem:[%s4609_s1 + $0x20] sm:$0xff] }
 0x39c   :  { %1770 = vadd.xlane.f32.xlu1 %v1769_v18  ;;  %v810_v18 = vpack.c.bf16 %v3586_v39, %v3587_v17 }
 0x441   :  { %v3077_v52 = vpop.f32.mrb[20].mxu0 }
 0x442   :  { %v987_v53 = vpop.f32.mrb[21].mxu0 }
 0x443   :  { %v3078_v54 = vpop.f32.mrb[22].mxu0  ;;  %3103 = vmatprep.mubr.msk.f32.mxu1 %vm283_vm2, %v987_v53 }
 0x444   :  { %v990_v29 = vpop.f32.mrb[23].mxu0 }
 0x445   :  { %3104 = vmatmul.mubr.msk.f32.gmra.mrb[16].mxu1 %vm283_vm2, %v990_v29 }
 0x446   :  { %3106 = vmatprep.mubr.msk.f32.mxu1 %vm283_vm2, %v3077_v52 }
 0x449   :  { %3107 = vmatmul.mubr.msk.f32.gmra.mrb[18].mxu1 %vm283_vm2, %v3078_v54 }
 0x44b   :  { %v3081_v32 = vpop.f32.mrb[24].mxu0 }
 0x44c   :  { %v1003_v55 = vpop.f32.mrb[25].mxu0 }
 0x44d   :  { %v3082_v37 = vpop.f32.mrb[26].mxu0  ;;  %3109 = vmatprep.mubr.msk.f32.mxu1 %vm283_vm2, %v1003_v55 }
 0x44e   :  { %v1006_v58 = vpop.f32.mrb[27].mxu0 }
 0x44f   :  { %3110 = vmatmul.mubr.msk.f32.gmra.mrb[20].mxu1 %vm283_vm2, %v1006_v58 }
 0x450   :  { %3112 = vmatprep.mubr.msk.f32.mxu1 %vm283_vm2, %v3081_v32 }
 0x453   :  { %3113 = vmatmul.mubr.msk.f32.gmra.mrb[22].mxu1 %vm283_vm2, %v3082_v37 }
 0x45d   :  { %v3096_v61 = vpop.f32.mrb[2].mxu1 }
 0x45e   :  { %v3093_v57 = vpop.f32.mrb[18].mxu0  ;;  %v1142_v40 = vpop.f32.mrb[3].mxu1 }
 0x45f   :  { %v1132_v60 = vpop.f32.mrb[19].mxu0 }
 0x460   :  { %3117 = vmatprep.mubr.msk.f32.mxu0 %vm1211_vm13, %v1132_v60 }
 0x461   :  { %3118 = vmatmul.mubr.msk.f32.vlgmr.msra.gmra.mrb[28].mxu0 %vm1211_vm13, %v3093_v57 }
 0x462   :  { %3120 = vmatprep.mubr.msk.f32.mxu0 %vm1211_vm13, %v1142_v40 }
 0x465   :  { %3121 = vmatmul.mubr.msk.f32.gmra.mrb[30].mxu0 %vm1211_vm13, %v3096_v61 }
 0x466   :  { %v3099_v63 = vpop.f32.mrb[12].mxu1 }
 0x467   :  { %v1152_v2 = vpop.f32.mrb[13].mxu1 }
 0x468   :  { %3123 = vmatprep.mubr.msk.f32.mxu0 %vm1211_vm13, %v1152_v2 }
 0x469   :  { %3124 = vmatmul.mubr.msk.f32.gmra.mrb[32].mxu0 %vm1211_vm13, %v3099_v63 }
 0x46a   :  { %v3102_v0 = vpop.f32.mrb[14].mxu1 }
 0x46b   :  { %v1162_v59 = vpop.f32.mrb[15].mxu1 }
 0x46c   :  { %3126 = vmatprep.mubr.msk.f32.mxu0 %vm1211_vm13, %v1162_v59 }
 0x46d   :  { %3127 = vmatmul.mubr.msk.f32.gmra.mrb[34].mxu0 %vm1211_vm13, %v3102_v0 }
 0x46e   :  { %3137 = vmatprep.mubr.msk.bf16.mxu0 %vm607_vm4, %v3906_v30 }
 0x518   :  { %v3105_v4 = vpop.f32.mrb[16].mxu1 }
 0x519   :  { %v1172_v47 = vpop.f32.mrb[17].mxu1 }
 0x51c   :  { %v3108_v5 = vpop.f32.mrb[18].mxu1 }
 0x51d   :  { %v1182_v6 = vpop.f32.mrb[19].mxu1 }
 0x522   :  { %v3111_v7 = vpop.f32.mrb[20].mxu1 }
 0x523   :  { %v1192_v9 = vpop.f32.mrb[21].mxu1 }
 0x526   :  { %v3114_v8 = vpop.f32.mrb[22].mxu1 }
 0x527   :  { %v1202_v10 = vpop.f32.mrb[23].mxu1 }
 0x534   :  { %v3119_v30 = vpop.f32.mrb[28].mxu0 }
 0x535   :  { %v1302_v11 = vpop.f32.mrb[29].mxu0 }
 0x536   :  { %v1341_v12 = vpack.c.bf16 %v3119_v30, %v1302_v11 }
 0x538   :  { %v3122_v13 = vpop.f32.mrb[30].mxu0  ;;  %3129 = vmatprep.subr.bf16.mxu0 %v1341_v12 }
 0x539   :  { %v1312_v14 = vpop.f32.mrb[31].mxu0  ;;  %3130 = vmatpush3.bf16.msra.mxu0 %v1341_v12 }
 0x53a   :  { %v1342_v16 = vpack.c.bf16 %v3122_v13, %v1312_v14 }
 0x53c   :  { %v3125_v19 = vpop.f32.mrb[32].mxu0  ;;  %3131 = vmatprep.subr.bf16.mxu0 %v1342_v16 }
 0x53d   :  { %v1322_v21 = vpop.f32.mrb[33].mxu0  ;;  %3132 = vmatpush3.bf16.msra.mxu0 %v1342_v16 }
 0x53e   :  { %v1343_v25 = vpack.c.bf16 %v3125_v19, %v1322_v21 }
 0x540   :  { %v3128_v27 = vpop.f32.mrb[34].mxu0  ;;  %3133 = vmatprep.subr.bf16.mxu0 %v1343_v25 }
 0x541   :  { %v1332_v28 = vpop.f32.mrb[35].mxu0  ;;  %3134 = vmatpush3.bf16.msra.mxu0 %v1343_v25 }
 0x542   :  { %v1344_v31 = vpack.c.bf16 %v3128_v27, %v1332_v28 }
 0x544   :  { %3135 = vmatprep.subr.bf16.mxu0 %v1344_v31 }
 0x545   :  { %3136 = vmatpush3.bf16.msra.mxu0 %v1344_v31  ;;  %v3582_v31 = vld [vmem:[%s4609_s1 + $0x8] sm:$0xff] }
 0x546   :  { %3165 = vmatprep.subr.mxu0 %v66_v34 }
 0x548   :  { %3138 = vmatmul.mubr.msk.bf16.vlgmr.msra.gmra.mrb[36].mxu0 %vm607_vm4, %v3912_v44  ;;  %v59_v44 = vld [vmem:[%s4610_s3 + $0x10] sm:$0xff] }
 0x549   :  { %3141 = vmatprep.mubr.msk.bf16.mxu0 %vm607_vm4, %v3918_v56  ;;  %3166 = vmatpush3.msra.mxu0 %v66_v34  ;;  %v60_v56 = vld [vmem:[%s4610_s3 + $0x18] sm:$0xff]  ;;  %v3583_v34 = vld [vmem:[%s4609_s1] sm:$0xff] }
 0x54a   :  { %3223 = vmatprep.subr.mxu0 %v4061_v36 }
 0x550   :  { %3142 = vmatmul.mubr.msk.bf16.gmra.mrb[40].mxu0 %vm607_vm4, %v3924_v62  ;;  %v3299_v62 = vpack.c.bf16 %v60_v56, %v59_v44  ;;  %v808_v44 = vpack.c.bf16 %v3582_v31, %v3583_v34 }
 0x551   :  { %3167 = vmatprep.mubr.msk.f32.mxu0 %vm1211_vm13, %v1132_v60 }
 0x552   :  { %3300 = vmatprep.subr.bf16.mxu1 %v3299_v62 }
 0x553   :  { %3302 = vmatpush3.bf16.msra.mxu1 %v3299_v62 }
 0x558   :  { %3168 = vmatmul.mubr.msk.f32.vlgmr.msra.gmra.mrb[44].mxu0 %vm1211_vm13, %v3093_v57 }
 0x559   :  { %3170 = vmatprep.mubr.msk.f32.mxu0 %vm1211_vm13, %v1142_v40  ;;  %3224 = vmatpush3.msra.mxu0 %v4061_v36 }
 0x55c   :  { %3171 = vmatmul.mubr.msk.f32.gmra.mrb[46].mxu0 %vm1211_vm13, %v3096_v61 }
 0x55d   :  { %3173 = vmatprep.mubr.msk.f32.mxu0 %vm1211_vm13, %v1152_v2 }
 0x560   :  { %3174 = vmatmul.mubr.msk.f32.gmra.mrb[48].mxu0 %vm1211_vm13, %v3099_v63 }
 0x561   :  { %3176 = vmatprep.mubr.msk.f32.mxu0 %vm1211_vm13, %v1162_v59 }
 0x564   :  { %3177 = vmatmul.mubr.msk.f32.gmra.mrb[50].mxu0 %vm1211_vm13, %v3102_v0 }
 0x565   :  { %3179 = vmatprep.mubr.msk.f32.mxu0 %vm1211_vm13, %v1172_v47 }
 0x568   :  { %3180 = vmatmul.mubr.msk.f32.gmra.mrb[52].mxu0 %vm1211_vm13, %v3105_v4 }
 0x569   :  { %3182 = vmatprep.mubr.msk.f32.mxu0 %vm1211_vm13, %v1182_v6 }
 0x56c   :  { %3183 = vmatmul.mubr.msk.f32.gmra.mrb[54].mxu0 %vm1211_vm13, %v3108_v5 }
 0x56d   :  { %3185 = vmatprep.mubr.msk.f32.mxu0 %vm1211_vm13, %v1192_v9 }
 0x570   :  { %3186 = vmatmul.mubr.msk.f32.gmra.mrb[56].mxu0 %vm1211_vm13, %v3111_v7 }
 0x571   :  { %3188 = vmatprep.mubr.msk.f32.mxu0 %vm1211_vm13, %v1202_v10 }
 0x574   :  { %3189 = vmatmul.mubr.msk.f32.gmra.mrb[58].mxu0 %vm1211_vm13, %v3114_v8 }
 0x61b   :  { %v3139_v24 = vpop.f32.mrb[36].mxu0 }
 0x61c   :  { %v1422_v20 = vmul.f32 1.442695, %v3139_v24  ;;  %v1379_v42 = vpop.f32.mrb[37].mxu0  ;;  %vm1412_vm1 = vcmp.gt.f32.partialorder %v3139_v24, 0.0 }
 0x61d   :  { %v1418_v46 = vmul.f32 1.442695, %v1379_v42  ;;  %v3140_v48 = vpop.f32.mrb[38].mxu0  ;;  %vm1410_vm14 = vcmp.gt.f32.partialorder %v1379_v42, 0.0 }
 0x61e   :  { %3454 = vpow2.f32 %v1422_v20  ;;  %v1424_v35 = vmul.f32 1.442695, %v3140_v48  ;;  %v1382_v49 = vpop.f32.mrb[39].mxu0  ;;  %vm1413_vm3 = vcmp.gt.f32.partialorder %v3140_v48, 0.0 }
 0x61f   :  { %3456 = vpow2.f32 %v1418_v46  ;;  %v1420_v33 = vmul.f32 1.442695, %v1382_v49  ;;  %vm1411_vm15 = vcmp.gt.f32.partialorder %v1382_v49, 0.0 }
 0x620   :  { %3458 = vpow2.f32 %v1424_v35  ;;  %v3588_v35 = vld [vmem:[%s4609_s1 + $0x38] sm:$0xff] }
 0x621   :  { %3460 = vpow2.f32 %v1420_v33 }
 0x623   :  { %v4081_v50 = vpop.f32.mrb[40].mxu0 }
 0x624   :  { %v1430_v43 = vmul.f32 1.442695, %v4081_v50  ;;  %v1395_v51 = vpop.f32.mrb[41].mxu0  ;;  %vm1416_vm7 = vcmp.gt.f32.partialorder %v4081_v50, 0.0 }
 0x625   :  { %v1426_v41 = vmul.f32 1.442695, %v1395_v51  ;;  %v4084_v52 = vpop.f32.mrb[42].mxu0  ;;  %vm1414_vm5 = vcmp.gt.f32.partialorder %v1395_v51, 0.0 }
 0x626   :  { %3462 = vpow2.f32 %v1430_v43  ;;  %v1432_v53 = vmul.f32 1.442695, %v4084_v52  ;;  %v4087_v54 = vpop.f32.mrb[43].mxu0  ;;  %vm1417_vm8 = vcmp.gt.f32.partialorder %v4084_v52, 0.0 }
 0x627   :  { %3464 = vpow2.f32 %v1426_v41  ;;  %v1428_v29 = vmul.f32 1.442695, %v4087_v54  ;;  %vm1415_vm6 = vcmp.gt.f32.partialorder %v4087_v54, 0.0 }
 0x628   :  { %v3455_v32 = vpop.eup %3454  ;;  %3466 = vpow2.f32 %v1432_v53  ;;  %v1750_v53 = vpop.xlane.xlu0 %1749 }
 0x629   :  { %v3457_v55 = vpop.eup %3456  ;;  %3468 = vpow2.f32 %v1428_v29  ;;  %v2763_v57 = vadd.f32 -1.0, %v3455_v32 }
 0x62a   :  { %v3459_v37 = vpop.eup %3458  ;;  %v2761_v58 = vadd.f32 -1.0, %v3457_v55 }
 0x62b   :  { %v3461_v61 = vpop.eup %3460  ;;  %v3169_v40 = vpop.f32.mrb[44].mxu0  ;;  %v2764_v59 = vadd.f32 -1.0, %v3459_v37  ;;  %v1444_v3 = vsel %vm1412_vm1, %v3139_v24, %v2763_v57 }
 0x62c   :  { %v2762_v60 = vadd.f32 -1.0, %v3461_v61  ;;  %2171 = vst.msk [vmem:[%s4612_s6 + $0x8] sm:$0xff] %vm1211_vm13, %v3169_v40  ;;  %v1669_v63 = vpop.f32.mrb[45].mxu0  ;;  %v1442_v2 = vsel %vm1410_vm14, %v1379_v42, %v2761_v58 }
 0x62d   :  { %v1796_v0 = vpack.c.bf16 %v3169_v40, %v1669_v63  ;;  %2170 = vst.msk [vmem:[%s4612_s6] sm:$0xff] %vm1211_vm13, %v1669_v63  ;;  %3153 = vmatprep.mubr.msk.f32.mxu1 %vm283_vm2, %v1442_v2  ;;  %3225 = vmatprep.mubr.msk.f32.mxu0 %vm1211_vm13, %v1669_v63  ;;  %v1445_v8 = vsel %vm1413_vm3, %v3140_v48, %v2764_v59  ;;  %v1772_v63 = vmax.f32 %v1750_v53, 1e-30 }
 0x62e   :  { %v1443_v45 = vsel %vm1411_vm15, %v1382_v49, %v2762_v60  ;;  %3226 = vmatmul.mubr.msk.f32.vlgmr.msra.gmra.mrb[60].mxu0 %vm1211_vm13, %v3169_v40  ;;  %v3589_v49 = vld [vmem:[%s4609_s1 + $0x30] sm:$0xff] }
 0x62f   :  { %3154 = vmatmul.mubr.msk.f32.vlgmr.msra.gmra.mrb[24].mxu1 %vm283_vm2, %v1443_v45  ;;  %v3172_v1 = vpop.f32.mrb[46].mxu0  ;;  %3191 = vmatprep.subr.bf16.mxu1 %v1796_v0  ;;  %v811_v33 = vpack.c.bf16 %v3588_v35, %v3589_v49 }
 0x630   :  { %v3463_v4 = vpop.eup %3462  ;;  %2173 = vst.msk [vmem:[%s4612_s6 + $0x18] sm:$0xff] %vm1211_vm13, %v3172_v1  ;;  %3156 = vmatprep.mubr.msk.f32.mxu1 %vm283_vm2, %v1444_v3  ;;  %v1679_v47 = vpop.f32.mrb[47].mxu0  ;;  %3192 = vmatpush3.bf16.msra.mxu1 %v1796_v0 }
 0x631   :  { %v3465_v5 = vpop.eup %3464  ;;  %v1797_v6 = vpack.c.bf16 %v3172_v1, %v1679_v47  ;;  %2172 = vst.msk [vmem:[%s4612_s6 + $0x10] sm:$0xff] %vm1211_vm13, %v1679_v47  ;;  %3228 = vmatprep.mubr.msk.f32.mxu0 %vm1211_vm13, %v1679_v47  ;;  %v2767_v30 = vadd.f32 -1.0, %v3463_v4 }
 0x632   :  { %v3467_v7 = vpop.eup %3466  ;;  %v2765_v9 = vadd.f32 -1.0, %v3465_v5  ;;  %3229 = vmatmul.mubr.msk.f32.gmra.mrb[62].mxu0 %vm1211_vm13, %v3172_v1 }
 0x633   :  { %v3469_v10 = vpop.eup %3468  ;;  %3157 = vmatmul.mubr.msk.f32.gmra.mrb[26].mxu1 %vm283_vm2, %v1445_v8  ;;  %v3175_v11 = vpop.f32.mrb[48].mxu0  ;;  %3193 = vmatprep.subr.bf16.mxu1 %v1797_v6  ;;  %v2768_v19 = vadd.f32 -1.0, %v3467_v7  ;;  %v1448_v27 = vsel %vm1416_vm7, %v4081_v50, %v2767_v30 }
 0x634   :  { %v2766_v12 = vadd.f32 -1.0, %v3469_v10  ;;  %2175 = vst.msk [vmem:[%s4612_s6 + $0x28] sm:$0xff] %vm1211_vm13, %v3175_v11  ;;  %v1689_v13 = vpop.f32.mrb[49].mxu0  ;;  %3194 = vmatpush3.bf16.msra.mxu1 %v1797_v6  ;;  %v1446_v14 = vsel %vm1414_vm5, %v1395_v51, %v2765_v9 }
 0x635   :  { %v1798_v16 = vpack.c.bf16 %v3175_v11, %v1689_v13  ;;  %2174 = vst.msk [vmem:[%s4612_s6 + $0x20] sm:$0xff] %vm1211_vm13, %v1689_v13  ;;  %3159 = vmatprep.mubr.msk.f32.mxu1 %vm283_vm2, %v1446_v14  ;;  %3231 = vmatprep.mubr.msk.f32.mxu0 %vm1211_vm13, %v1689_v13  ;;  %v1449_v62 = vsel %vm1417_vm8, %v4084_v52, %v2768_v19 }
 0x636   :  { %3232 = vmatmul.mubr.msk.f32.gmra.mrb[64].mxu0 %vm1211_vm13, %v3175_v11  ;;  %v1447_v21 = vsel %vm1415_vm6, %v4087_v54, %v2766_v12  ;;  %v1756_v54 = vpop.xlane.xlu0 %1755 }
 0x637   :  { %3160 = vmatmul.mubr.msk.f32.gmra.mrb[28].mxu1 %vm283_vm2, %v1447_v21  ;;  %v3178_v25 = vpop.f32.mrb[50].mxu0  ;;  %3195 = vmatprep.subr.bf16.mxu1 %v1798_v16  ;;  %v1774_v61 = vmax.f32 %v1756_v54, 1e-30 }
 0x638   :  { %2177 = vst.msk [vmem:[%s4612_s6 + $0x38] sm:$0xff] %vm1211_vm13, %v3178_v25  ;;  %3162 = vmatprep.mubr.msk.f32.mxu1 %vm283_vm2, %v1448_v27  ;;  %v1699_v28 = vpop.f32.mrb[51].mxu0  ;;  %3196 = vmatpush3.bf16.msra.mxu1 %v1798_v16 }
 0x639   :  { %v1799_v56 = vpack.c.bf16 %v3178_v25, %v1699_v28  ;;  %2176 = vst.msk [vmem:[%s4612_s6 + $0x30] sm:$0xff] %vm1211_vm13, %v1699_v28  ;;  %3234 = vmatprep.mubr.msk.f32.mxu0 %vm1211_vm13, %v1699_v28  ;;  %3470 = vrcp.f32 %v1774_v61 }
 0x63a   :  { %3235 = vmatmul.mubr.msk.f32.gmra.mrb[66].mxu0 %vm1211_vm13, %v3178_v25  ;;  %v1762_v55 = vpop.xlane.xlu0 %1761 }
 0x63b   :  { %3163 = vmatmul.mubr.msk.f32.gmra.mrb[30].mxu1 %vm283_vm2, %v1449_v62  ;;  %v3181_v38 = vpop.f32.mrb[52].mxu0  ;;  %3197 = vmatprep.subr.bf16.mxu1 %v1799_v56  ;;  %v1776_v9 = vmax.f32 %v1762_v55, 1e-30  ;;  %vm2542_vm2 = vcmask 15368  }
 0x63c   :  { %v1709_v26 = vpop.f32.mrb[53].mxu0  ;;  %3198 = vmatpush3.bf16.msra.mxu1 %v1799_v56  ;;  %3199 = vmatprep.mubr.msk.bf16.mxu1 %vm607_vm4, %v808_v44 }
 0x63d   :  { %v1989_v24 = vpack.c.bf16 %v3181_v38, %v1709_v26 }
 0x63e   :  { %v1768_v3 = vpop.xlane.xlu0 %1767 }
 0x63f   :  { %v3184_v20 = vpop.f32.mrb[54].mxu0  ;;  %3200 = vmatmul.mubr.msk.bf16.vlgmr.msra.gmra.mrb[32].mxu1 %vm607_vm4, %v809_v23  ;;  %3207 = vmatprep.subr.bf16.mxu1 %v1989_v24  ;;  %v1778_v7 = vmax.f32 %v1768_v3, 1e-30 }
 0x640   :  { %v1719_v42 = vpop.f32.mrb[55].mxu0  ;;  %3208 = vmatpush3.bf16.msra.mxu1 %v1989_v24  ;;  %3203 = vmatprep.mubr.msk.bf16.mxu1 %vm607_vm4, %v810_v18 }
 0x641   :  { %v1990_v46 = vpack.c.bf16 %v3184_v20, %v1719_v42 }
 0x643   :  { %v3187_v48 = vpop.f32.mrb[56].mxu0  ;;  %3209 = vmatprep.subr.bf16.mxu1 %v1990_v46  ;;  %v3471_v16 = vpop.eup %3470 }
 0x644   :  { %v1729_v50 = vpop.f32.mrb[57].mxu0  ;;  %3210 = vmatpush3.bf16.msra.mxu1 %v1990_v46 }
 0x645   :  { %v1991_v43 = vpack.c.bf16 %v3187_v48, %v1729_v50 }
 0x647   :  { %v3190_v51 = vpop.f32.mrb[58].mxu0  ;;  %3204 = vmatmul.mubr.msk.bf16.gmra.mrb[36].mxu1 %vm607_vm4, %v811_v33  ;;  %3211 = vmatprep.subr.bf16.mxu1 %v1991_v43 }
 0x648   :  { %v1739_v41 = vpop.f32.mrb[59].mxu0  ;;  %3212 = vmatpush3.bf16.msra.mxu1 %v1991_v43  ;;  %3215 = vmatprep.mubr.msk.bf16.mxu1 %vm607_vm4, %v808_v44 }
 0x649   :  { %v1992_v52 = vpack.c.bf16 %v3190_v51, %v1739_v41 }
 0x64b   :  { %3213 = vmatprep.subr.bf16.mxu1 %v1992_v52 }
 0x64c   :  { %3214 = vmatpush3.bf16.msra.mxu1 %v1992_v52 }
 0x64d   :  { %3237 = vmatprep.subr.mxu1 %v4061_v36 }
 0x64f   :  { %3216 = vmatmul.mubr.msk.bf16.vlgmr.msra.gmra.mrb[40].mxu1 %vm607_vm4, %v809_v23 }
 0x650   :  { %3219 = vmatprep.mubr.msk.bf16.mxu1 %vm607_vm4, %v810_v18  ;;  %3238 = vmatpush3.msra.mxu1 %v4061_v36  ;;  %v1753_v36 = vpop.xlane.xlu1 %1752 }
 0x651   :  { %v1773_v45 = vmax.f32 %v1753_v36, 1e-30 }
 0x654   :  { %v1759_v29 = vpop.xlane.xlu1 %1758 }
 0x655   :  { %v1775_v60 = vmax.f32 %v1759_v29, 1e-30 }
 0x657   :  { %3220 = vmatmul.mubr.msk.bf16.gmra.mrb[44].mxu1 %vm607_vm4, %v811_v33  ;;  %3472 = vrcp.f32 %v1775_v60 }
 0x658   :  { %3239 = vmatprep.mubr.msk.f32.mxu1 %vm1211_vm13, %v1709_v26  ;;  %v1765_v40 = vpop.xlane.xlu1 %1764  ;;  %3474 = vrcp.f32 %v1772_v63 }
 0x659   :  { %3476 = vrcp.f32 %v1773_v45  ;;  %v1777_v30 = vmax.f32 %v1765_v40, 1e-30 }
 0x65a   :  { %3478 = vrcp.f32 %v1778_v7 }
 0x65b   :  { %3480 = vrcp.f32 %v1776_v9 }
 0x65c   :  { %v1771_v47 = vpop.xlane.xlu1 %1770 }
 0x65d   :  { %v1779_v10 = vmax.f32 %v1771_v47, 1e-30 }
 0x65f   :  { %3240 = vmatmul.mubr.msk.f32.vlgmr.msra.gmra.mrb[48].mxu1 %vm1211_vm13, %v3181_v38  ;;  %3482 = vrcp.f32 %v1779_v10 }
 0x660   :  { %3242 = vmatprep.mubr.msk.f32.mxu1 %vm1211_vm13, %v1719_v42  ;;  %3484 = vrcp.f32 %v1777_v30 }
 0x661   :  { %v3473_v19 = vpop.eup %3472 }
 0x662   :  { %v3475_v25 = vpop.eup %3474 }
 0x663   :  { %3243 = vmatmul.mubr.msk.f32.gmra.mrb[50].mxu1 %vm1211_vm13, %v3184_v20  ;;  %v3477_v44 = vpop.eup %3476 }
 0x664   :  { %3245 = vmatprep.mubr.msk.f32.mxu1 %vm1211_vm13, %v1729_v50  ;;  %v3479_v39 = vpop.eup %3478 }
 0x665   :  { %v3481_v17 = vpop.eup %3480 }
 0x667   :  { %3246 = vmatmul.mubr.msk.f32.gmra.mrb[52].mxu1 %vm1211_vm13, %v3187_v48 }
 0x668   :  { %3248 = vmatprep.mubr.msk.f32.mxu1 %vm1211_vm13, %v1739_v41 }
 0x669   :  { %v3483_v20 = vpop.eup %3482 }
 0x66a   :  { %v3485_v46 = vpop.eup %3484 }
 0x66b   :  { %3249 = vmatmul.mubr.msk.f32.gmra.mrb[54].mxu1 %vm1211_vm13, %v3190_v51 }
 0x701   :  { %v4186_v32 = vpop.f32.mrb[60].mxu0 }
 0x702   :  { %v3155_v37 = vpop.f32.mrb[24].mxu1  ;;  %v4188_v58 = vpop.f32.mrb[61].mxu0 }
 0x703   :  { %2179 = vst.msk [vmem:[%s4613_s7 + $0x8] sm:$0xff] %vm69_vm0, %v3155_v37  ;;  %v1540_v57 = vpop.f32.mrb[25].mxu1 }
 0x704   :  { %2178 = vst.msk [vmem:[%s4613_s7] sm:$0xff] %vm69_vm0, %v1540_v57 }
 0x705   :  { %v4198_v2 = vpop.f32.mrb[62].mxu0 }
 0x706   :  { %v3158_v0 = vpop.f32.mrb[26].mxu1  ;;  %v4200_v59 = vpop.f32.mrb[63].mxu0 }
 0x707   :  { %2181 = vst.msk [vmem:[%s4613_s7 + $0x18] sm:$0xff] %vm69_vm0, %v3158_v0  ;;  %v1550_v1 = vpop.f32.mrb[27].mxu1 }
 0x708   :  { %2180 = vst.msk [vmem:[%s4613_s7 + $0x10] sm:$0xff] %vm69_vm0, %v1550_v1 }
 0x709   :  { %v4210_v4 = vpop.f32.mrb[64].mxu0 }
 0x70a   :  { %v3161_v5 = vpop.f32.mrb[28].mxu1  ;;  %v4212_v6 = vpop.f32.mrb[65].mxu0 }
 0x70b   :  { %2183 = vst.msk [vmem:[%s4613_s7 + $0x28] sm:$0xff] %vm69_vm0, %v3161_v5  ;;  %v1560_v8 = vpop.f32.mrb[29].mxu1 }
 0x70c   :  { %2182 = vst.msk [vmem:[%s4613_s7 + $0x20] sm:$0xff] %vm69_vm0, %v1560_v8 }
 0x70d   :  { %v4222_v11 = vpop.f32.mrb[66].mxu0 }
 0x70e   :  { %v3164_v12 = vpop.f32.mrb[30].mxu1  ;;  %v4224_v13 = vpop.f32.mrb[67].mxu0 }
 0x70f   :  { %2185 = vst.msk [vmem:[%s4613_s7 + $0x38] sm:$0xff] %vm69_vm0, %v3164_v12  ;;  %v1570_v14 = vpop.f32.mrb[31].mxu1 }
 0x710   :  { %2184 = vst.msk [vmem:[%s4613_s7 + $0x30] sm:$0xff] %vm69_vm0, %v1570_v14  ;;  %vm2364_vm0 = vcmask 7168  }
 0x712   :  { %v3201_v21 = vpop.f32.mrb[32].mxu1 }
 0x713   :  { %v4234_v27 = vmul.f32 %v3471_v16, %v3201_v21  ;;  %v1846_v28 = vpop.f32.mrb[33].mxu1 }
 0x714   :  { %v4236_v31 = vmul.f32 %v3475_v25, %v1846_v28  ;;  %v3202_v34 = vpop.f32.mrb[34].mxu1 }
 0x715   :  { %v4238_v56 = vmul.f32 %v3473_v19, %v3202_v34  ;;  %v1849_v62 = vpop.f32.mrb[35].mxu1  ;;  %v1887_v22 = vmul.f32 %v4234_v27, %v4234_v27 }
 0x716   :  { %v4242_v15 = vmul.f32 %v3477_v44, %v1849_v62  ;;  %v1885_v26 = vmul.f32 %v4236_v31, %v4236_v31 }
 0x717   :  { %v1899_v23 = vsel %vm1211_vm13, %v1887_v22, 0.0  ;;  %v1888_v38 = vmul.f32 %v4238_v56, %v4238_v56 }
 0x718   :  { %1900 = vadd.xlane.f32.xlu0 %v1899_v23  ;;  %v1886_v24 = vmul.f32 %v4242_v15, %v4242_v15  ;;  %v1893_v49 = vsel %vm1211_vm13, %v1885_v26, 0.0 }
 0x719   :  { %v1902_v18 = vsel %vm1211_vm13, %v1888_v38, 0.0 }
 0x71a   :  { %1903 = vadd.xlane.f32.xlu1 %v1902_v18  ;;  %v3205_v42 = vpop.f32.mrb[36].mxu1  ;;  %v1896_v51 = vsel %vm1211_vm13, %v1886_v24, 0.0 }
 0x71b   :  { %v4252_v48 = vmul.f32 %v3479_v39, %v3205_v42  ;;  %v1862_v35 = vpop.f32.mrb[37].mxu1 }
 0x71c   :  { %v4255_v33 = vmul.f32 %v3481_v17, %v1862_v35  ;;  %v3206_v50 = vpop.f32.mrb[38].mxu1  ;;  %1894 = vadd.xlane.f32.xlu0 %v1893_v49 }
 0x71d   :  { %v4257_v43 = vmul.f32 %v3483_v20, %v3206_v50  ;;  %v1865_v41 = vpop.f32.mrb[39].mxu1  ;;  %v1891_v52 = vmul.f32 %v4252_v48, %v4252_v48 }
 0x71e   :  { %1897 = vadd.xlane.f32.xlu1 %v1896_v51  ;;  %v4262_v53 = vmul.f32 %v3485_v46, %v1865_v41  ;;  %v1889_v36 = vmul.f32 %v4255_v33, %v4255_v33 }
 0x71f   :  { %v1911_v54 = vsel %vm1211_vm13, %v1891_v52, 0.0  ;;  %v1892_v29 = vmul.f32 %v4257_v43, %v4257_v43 }
 0x720   :  { %1912 = vadd.xlane.f32.xlu0 %v1911_v54  ;;  %v1890_v55 = vmul.f32 %v4262_v53, %v4262_v53  ;;  %v1905_v61 = vsel %vm1211_vm13, %v1889_v36, 0.0 }
 0x721   :  { %v1914_v37 = vsel %vm1211_vm13, %v1892_v29, 0.0 }
 0x722   :  { %1915 = vadd.xlane.f32.xlu1 %v1914_v37  ;;  %v3217_v57 = vpop.f32.mrb[40].mxu1  ;;  %v1908_v63 = vsel %vm1211_vm13, %v1890_v55, 0.0 }
 0x723   :  { %v4273_v40 = vmul.f32 %v3471_v16, %v3217_v57  ;;  %v2027_v60 = vpop.f32.mrb[41].mxu1 }
 0x724   :  { %v4276_v0 = vmul.f32 %v3475_v25, %v2027_v60  ;;  %v3218_v45 = vpop.f32.mrb[42].mxu1  ;;  %1906 = vadd.xlane.f32.xlu0 %v1905_v61 }
 0x725   :  { %v4278_v1 = vmul.f32 %v3473_v19, %v3218_v45  ;;  %v2030_v3 = vpop.f32.mrb[43].mxu1  ;;  %v2068_v47 = vmul.f32 %v4273_v40, %v4273_v40 }
 0x726   :  { %v4282_v5 = vmul.f32 %v3477_v44, %v2030_v3  ;;  %1909 = vadd.xlane.f32.xlu1 %v1908_v63  ;;  %v2066_v8 = vmul.f32 %v4276_v0, %v4276_v0 }
 0x727   :  { %v2080_v7 = vsel %vm1211_vm13, %v2068_v47, 0.0  ;;  %v2069_v9 = vmul.f32 %v4278_v1, %v4278_v1 }
 0x728   :  { %2081 = vadd.xlane.f32.xlu0 %v2080_v7  ;;  %v2067_v30 = vmul.f32 %v4282_v5, %v4282_v5  ;;  %v2074_v16 = vsel %vm1211_vm13, %v2066_v8, 0.0 }
 0x729   :  { %v2083_v10 = vsel %vm1211_vm13, %v2069_v9, 0.0 }
 0x72a   :  { %v3221_v12 = vpop.f32.mrb[44].mxu1  ;;  %2084 = vadd.xlane.f32.xlu1 %v2083_v10  ;;  %v2077_v34 = vsel %vm1211_vm13, %v2067_v30, 0.0 }
 0x72b   :  { %v2043_v14 = vpop.f32.mrb[45].mxu1  ;;  %v4293_v19 = vmul.f32 %v3479_v39, %v3221_v12 }
 0x72c   :  { %v4295_v21 = vmul.f32 %v3481_v17, %v2043_v14  ;;  %v3222_v25 = vpop.f32.mrb[46].mxu1  ;;  %2075 = vadd.xlane.f32.xlu0 %v2074_v16 }
 0x72d   :  { %v2046_v28 = vpop.f32.mrb[47].mxu1  ;;  %v4298_v44 = vmul.f32 %v3483_v20, %v3222_v25  ;;  %v2072_v26 = vmul.f32 %v4293_v19, %v4293_v19 }
 0x72e   :  { %v4300_v62 = vmul.f32 %v3485_v46, %v2046_v28  ;;  %2078 = vadd.xlane.f32.xlu1 %v2077_v34  ;;  %v2070_v22 = vmul.f32 %v4295_v21, %v4295_v21 }
 0x72f   :  { %v2073_v18 = vmul.f32 %v4298_v44, %v4298_v44  ;;  %v2092_v20 = vsel %vm1211_vm13, %v2072_v26, 0.0 }
 0x730   :  { %v2086_v23 = vsel %vm1211_vm13, %v2070_v22, 0.0  ;;  %v2071_v38 = vmul.f32 %v4300_v62, %v4300_v62 }
 0x731   :  { %2087 = vadd.xlane.f32.xlu0 %v2086_v23  ;;  %v2095_v46 = vsel %vm1211_vm13, %v2073_v18, 0.0 }
 0x732   :  { %v4309_v39 = vpop.f32.mrb[48].mxu1  ;;  %v2089_v17 = vsel %vm1211_vm13, %v2071_v38, 0.0 }
 0x733   :  { %v4314_v24 = vpop.f32.mrb[49].mxu1  ;;  %2090 = vadd.xlane.f32.xlu1 %v2089_v17 }
 0x735   :  { %2093 = vadd.xlane.f32.xlu0 %v2092_v20 }
 0x736   :  { %v4317_v42 = vpop.f32.mrb[50].mxu1 }
 0x737   :  { %v4320_v35 = vpop.f32.mrb[51].mxu1  ;;  %2096 = vadd.xlane.f32.xlu1 %v2095_v46 }
 0x73a   :  { %v4322_v49 = vpop.f32.mrb[52].mxu1 }
 0x73b   :  { %v4324_v50 = vpop.f32.mrb[53].mxu1 }
 0x73e   :  { %v4326_v51 = vpop.f32.mrb[54].mxu1 }
 0x73f   :  { %v4328_v41 = vpop.f32.mrb[55].mxu1 }
 0x7a5   :  { %v1901_v52 = vpop.xlane.xlu0 %1900 }
 0x7a6   :  { %v1919_v36 = vmax.f32 %v1901_v52, 1e-24 }
 0x7a7   :  { %v1904_v54 = vpop.xlane.xlu1 %1903 }
 0x7a8   :  { %3486 = vrsqrt.f32 %v1919_v36  ;;  %v1920_v29 = vmax.f32 %v1904_v54, 1e-24 }
 0x7a9   :  { %v1895_v55 = vpop.xlane.xlu0 %1894 }
 0x7aa   :  { %3488 = vrsqrt.f32 %v1920_v29  ;;  %v1917_v37 = vmax.f32 %v1895_v55, 1e-24 }
 0x7ab   :  { %v1898_v61 = vpop.xlane.xlu1 %1897 }
 0x7ac   :  { %3490 = vrsqrt.f32 %v1917_v37  ;;  %v1918_v57 = vmax.f32 %v1898_v61, 1e-24 }
 0x7ad   :  { %v1913_v60 = vpop.xlane.xlu0 %1912 }
 0x7ae   :  { %3492 = vrsqrt.f32 %v1918_v57  ;;  %v1923_v63 = vmax.f32 %v1913_v60, 1e-24 }
 0x7af   :  { %v1916_v45 = vpop.xlane.xlu1 %1915 }
 0x7b0   :  { %3494 = vrsqrt.f32 %v1923_v63  ;;  %v1924_v3 = vmax.f32 %v1916_v45, 1e-24 }
 0x7b1   :  { %v1907_v47 = vpop.xlane.xlu0 %1906 }
 0x7b2   :  { %v3487_v7 = vpop.eup %3486  ;;  %3496 = vrsqrt.f32 %v1924_v3  ;;  %v1921_v9 = vmax.f32 %v1907_v47, 1e-24 }
 0x7b3   :  { %v1935_v8 = vmul.f32 %v3487_v7, %v4234_v27  ;;  %v1910_v10 = vpop.xlane.xlu1 %1909 }
 0x7b4   :  { %v3489_v30 = vpop.eup %3488  ;;  %3498 = vrsqrt.f32 %v1921_v9  ;;  %v1922_v12 = vmax.f32 %v1910_v10, 1e-24 }
 0x7b5   :  { %v2799_v14 = vmul.f32 -1.442695, %v1935_v8  ;;  %v1936_v16 = vmul.f32 %v3489_v30, %v4238_v56  ;;  %v2082_v25 = vpop.xlane.xlu0 %2081 }
 0x7b6   :  { %v3491_v28 = vpop.eup %3490  ;;  %3500 = vrsqrt.f32 %v1922_v12  ;;  %v2100_v34 = vmax.f32 %v2082_v25, 1e-24 }
 0x7b7   :  { %3502 = vpow2.f32 %v2799_v14  ;;  %v2800_v22 = vmul.f32 -1.442695, %v1936_v16  ;;  %v1933_v23 = vmul.f32 %v3491_v28, %v4236_v31  ;;  %v2085_v38 = vpop.xlane.xlu1 %2084 }
 0x7b8   :  { %v3493_v26 = vpop.eup %3492  ;;  %3504 = vrsqrt.f32 %v2100_v34  ;;  %v2101_v17 = vmax.f32 %v2085_v38, 1e-24 }
 0x7b9   :  { %3506 = vpow2.f32 %v2800_v22  ;;  %v2797_v27 = vmul.f32 -1.442695, %v1933_v23  ;;  %v1934_v18 = vmul.f32 %v3493_v26, %v4242_v15  ;;  %v2076_v20 = vpop.xlane.xlu0 %2075 }
 0x7ba   :  { %v3495_v46 = vpop.eup %3494  ;;  %3508 = vrsqrt.f32 %v2101_v17  ;;  %v2098_v29 = vmax.f32 %v2076_v20, 1e-24 }
 0x7bb   :  { %3510 = vpow2.f32 %v2797_v27  ;;  %v2798_v56 = vmul.f32 -1.442695, %v1934_v18  ;;  %v1939_v52 = vmul.f32 %v3495_v46, %v4252_v48  ;;  %v2079_v36 = vpop.xlane.xlu1 %2078 }
 0x7bc   :  { %v3497_v54 = vpop.eup %3496  ;;  %v2099_v61 = vmax.f32 %v2079_v36, 1e-24 }
 0x7bd   :  { %3512 = vpow2.f32 %v2798_v56  ;;  %v2803_v31 = vmul.f32 -1.442695, %v1939_v52  ;;  %v1940_v55 = vmul.f32 %v3497_v54, %v4257_v43 }
 0x7be   :  { %v3499_v37 = vpop.eup %3498  ;;  %v2088_v7 = vpop.xlane.xlu0 %2087 }
 0x7bf   :  { %3514 = vpow2.f32 %v2803_v31  ;;  %v2804_v57 = vmul.f32 -1.442695, %v1940_v55  ;;  %v1937_v15 = vmul.f32 %v3499_v37, %v4255_v33  ;;  %v2102_v14 = vmax.f32 %v2088_v7, 1e-24 }
 0x7c0   :  { %v3501_v60 = vpop.eup %3500  ;;  %3516 = vrsqrt.f32 %v2098_v29  ;;  %v2091_v28 = vpop.xlane.xlu1 %2090 }
 0x7c1   :  { %v3503_v63 = vpop.eup %3502  ;;  %3518 = vpow2.f32 %v2804_v57  ;;  %v2801_v45 = vmul.f32 -1.442695, %v1937_v15  ;;  %v1938_v48 = vmul.f32 %v3501_v60, %v4262_v53  ;;  %v2103_v17 = vmax.f32 %v2091_v28, 1e-24 }
 0x7c2   :  { %v3505_v3 = vpop.eup %3504  ;;  %v1967_v47 = vadd.f32 1.0, %v3503_v63  ;;  %3520 = vrsqrt.f32 %v2099_v61  ;;  %v2094_v18 = vpop.xlane.xlu0 %2093 }
 0x7c3   :  { %v3507_v9 = vpop.eup %3506  ;;  %3522 = vpow2.f32 %v2801_v45  ;;  %v2802_v43 = vmul.f32 -1.442695, %v1938_v48  ;;  %v2116_v8 = vmul.f32 %v3505_v3, %v4273_v40  ;;  %v2104_v29 = vmax.f32 %v2094_v18, 1e-24 }
 0x7c4   :  { %v3509_v10 = vpop.eup %3508  ;;  %3524 = vrcp.f32 %v1967_v47  ;;  %v1968_v30 = vadd.f32 1.0, %v3507_v9  ;;  %v2097_v46 = vpop.xlane.xlu1 %2096 }
 0x7c5   :  { %v3511_v33 = vpop.eup %3510  ;;  %3526 = vpow2.f32 %v2802_v43  ;;  %v2117_v12 = vmul.f32 %v3509_v10, %v4278_v1  ;;  %v2811_v25 = vmul.f32 -1.442695, %v2116_v8  ;;  %v2105_v61 = vmax.f32 %v2097_v46, 1e-24 }
 0x7c6   :  { %3528 = vrcp.f32 %v1968_v30  ;;  %v1965_v16 = vadd.f32 1.0, %v3511_v33 }
 0x7c7   :  { %v3513_v53 = vpop.eup %3512  ;;  %v2812_v23 = vmul.f32 -1.442695, %v2117_v12 }
 0x7c8   :  { %3530 = vrcp.f32 %v1965_v16  ;;  %v1966_v34 = vadd.f32 1.0, %v3513_v53 }
 0x7c9   :  { %v3515_v22 = vpop.eup %3514  ;;  %3532 = vrsqrt.f32 %v2102_v14 }
 0x7ca   :  { %v3517_v38 = vpop.eup %3516  ;;  %3534 = vrcp.f32 %v1966_v34  ;;  %v1971_v40 = vadd.f32 1.0, %v3515_v22 }
 0x7cb   :  { %v3519_v26 = vpop.eup %3518  ;;  %3536 = vpow2.f32 %v2811_v25  ;;  %v2114_v54 = vmul.f32 %v3517_v38, %v4276_v0 }
 0x7cc   :  { %v3521_v27 = vpop.eup %3520  ;;  %3538 = vrcp.f32 %v1971_v40  ;;  %v1972_v1 = vadd.f32 1.0, %v3519_v26 }
 0x7cd   :  { %v3523_v20 = vpop.eup %3522  ;;  %3540 = vpow2.f32 %v2812_v23  ;;  %v2115_v57 = vmul.f32 %v3521_v27, %v4282_v5  ;;  %v2809_v48 = vmul.f32 -1.442695, %v2114_v54 }
 0x7ce   :  { %v3525_v56 = vpop.eup %3524  ;;  %3542 = vrcp.f32 %v1972_v1  ;;  %v1969_v52 = vadd.f32 1.0, %v3523_v20 }
 0x7cf   :  { %v3527_v36 = vpop.eup %3526  ;;  %2188 = vst.msk [vmem:[%s4614_s10 + $0x10] sm:$0xff] %vm1211_vm13, %v3525_v56  ;;  %3544 = vrsqrt.f32 %v2103_v17  ;;  %v2325_v31 = vmul.f32 %v3525_v56, %v4200_v59  ;;  %v2504_v0 = vmul.f32 %v3525_v56, %v4320_v35  ;;  %v2810_v9 = vmul.f32 -1.442695, %v2115_v57 }
 0x7d0   :  { %v3529_v55 = vpop.eup %3528  ;;  %3546 = vrcp.f32 %v1969_v52  ;;  %v1970_v37 = vadd.f32 1.0, %v3527_v36 }
 0x7d1   :  { %2189 = vst.msk [vmem:[%s4614_s10 + $0x18] sm:$0xff] %vm1211_vm13, %v3529_v55  ;;  %v2337_v15 = vsel %vm1211_vm13, %v2325_v31, 0.0  ;;  %v2326_v60 = vmul.f32 %v3529_v55, %v4198_v2  ;;  %v2505_v5 = vmul.f32 %v3529_v55, %v4317_v42  ;;  %v2516_v43 = vsel %vm1211_vm13, %v2504_v0, 0.0 }
 0x7d2   :  { %v3531_v63 = vpop.eup %3530  ;;  %3548 = vrcp.f32 %v1970_v37  ;;  %2338 = vadd.xlane.f32.xlu0 %v2337_v15 }
 0x7d3   :  { %v3533_v45 = vpop.eup %3532  ;;  %2186 = vst.msk [vmem:[%s4614_s10] sm:$0xff] %vm1211_vm13, %v3531_v63  ;;  %3550 = vrsqrt.f32 %v2104_v29  ;;  %v2340_v3 = vsel %vm1211_vm13, %v2326_v60, 0.0  ;;  %v2323_v8 = vmul.f32 %v3531_v63, %v4188_v58  ;;  %v2519_v12 = vsel %vm1211_vm13, %v2505_v5, 0.0 }
 0x7d4   :  { %v3535_v47 = vpop.eup %3534  ;;  %3552 = vrsqrt.f32 %v2105_v61  ;;  %2341 = vadd.xlane.f32.xlu1 %v2340_v3  ;;  %v2118_v33 = vmul.f32 %v3533_v45, %v4295_v21  ;;  %v2502_v28 = vmul.f32 %v3531_v63, %v4314_v24 }
 0x7d5   :  { %v3537_v7 = vpop.eup %3536  ;;  %2187 = vst.msk [vmem:[%s4614_s10 + $0x8] sm:$0xff] %vm1211_vm13, %v3535_v47  ;;  %3554 = vpow2.f32 %v2809_v48  ;;  %v2324_v14 = vmul.f32 %v3535_v47, %v4186_v32  ;;  %v2331_v25 = vsel %vm1211_vm13, %v2323_v8, 0.0  ;;  %v2503_v23 = vmul.f32 %v3535_v47, %v4309_v39 }
 0x7d6   :  { %v3539_v10 = vpop.eup %3538  ;;  %2517 = vadd.xlane.f32.xlu0 %v2516_v43  ;;  %3556 = vpow2.f32 %v2810_v9  ;;  %v2813_v21 = vmul.f32 -1.442695, %v2118_v33  ;;  %v2148_v40 = vadd.f32 1.0, %v3537_v7  ;;  %v2510_v27 = vsel %vm1211_vm13, %v2502_v28, 0.0 }
 0x7d7   :  { %v3541_v30 = vpop.eup %3540  ;;  %2192 = vst.msk [vmem:[%s4614_s10 + $0x30] sm:$0xff] %vm1211_vm13, %v3539_v10  ;;  %v2334_v22 = vsel %vm1211_vm13, %v2324_v14, 0.0  ;;  %v2329_v1 = vmul.f32 %v3539_v10, %v4224_v13  ;;  %v2513_v52 = vsel %vm1211_vm13, %v2503_v23, 0.0 }
 0x7d8   :  { %v3543_v16 = vpop.eup %3542  ;;  %2520 = vadd.xlane.f32.xlu1 %v2519_v12  ;;  %v2149_v18 = vadd.f32 1.0, %v3541_v30  ;;  %3558 = vpow2.f32 %v2813_v21 }
 0x7d9   :  { %v3545_v53 = vpop.eup %3544  ;;  %2193 = vst.msk [vmem:[%s4614_s10 + $0x38] sm:$0xff] %vm1211_vm13, %v3543_v16  ;;  %v2330_v36 = vmul.f32 %v3543_v16, %v4222_v11  ;;  %3560 = vrcp.f32 %v2148_v40  ;;  %v2349_v37 = vsel %vm1211_vm13, %v2329_v1, 0.0  ;;  %v2509_v61 = vmul.f32 %v3543_v16, %v4326_v51 }
 0x7da   :  { %v3547_v34 = vpop.eup %3546  ;;  %2332 = vadd.xlane.f32.xlu0 %v2331_v25  ;;  %v2119_v17 = vmul.f32 %v3545_v53, %v4300_v62  ;;  %v2508_v62 = vmul.f32 %v3539_v10, %v4328_v41  ;;  %3562 = vrcp.f32 %v2149_v18 }
 0x7db   :  { %2190 = vst.msk [vmem:[%s4614_s10 + $0x20] sm:$0xff] %vm1211_vm13, %v3547_v34  ;;  %v2327_v60 = vmul.f32 %v3547_v34, %v4212_v6  ;;  %v2531_v63 = vsel %vm1211_vm13, %v2509_v61, 0.0  ;;  %v2506_v5 = vmul.f32 %v3547_v34, %v4324_v50 }
 0x7dc   :  { %v3549_v38 = vpop.eup %3548  ;;  %2335 = vadd.xlane.f32.xlu1 %v2334_v22  ;;  %v2814_v31 = vmul.f32 -1.442695, %v2119_v17  ;;  %v2528_v15 = vsel %vm1211_vm13, %v2508_v62, 0.0 }
 0x7dd   :  { %v3551_v26 = vpop.eup %3550  ;;  %2191 = vst.msk [vmem:[%s4614_s10 + $0x28] sm:$0xff] %vm1211_vm13, %v3549_v38  ;;  %v2328_v45 = vmul.f32 %v3549_v38, %v4210_v4  ;;  %v2343_v3 = vsel %vm1211_vm13, %v2327_v60, 0.0  ;;  %v2507_v43 = vmul.f32 %v3549_v38, %v4322_v49  ;;  %v2522_v30 = vsel %vm1211_vm13, %v2506_v5, 0.0 }
 0x7de   :  { %v3553_v20 = vpop.eup %3552  ;;  %v2120_v46 = vmul.f32 %v3551_v26, %v4293_v19  ;;  %2511 = vadd.xlane.f32.xlu0 %v2510_v27 }
 0x7df   :  { %v2121_v56 = vmul.f32 %v3553_v20, %v4298_v44  ;;  %v3555_v29 = vpop.eup %3554  ;;  %v2352_v44 = vsel %vm1211_vm13, %v2330_v36, 0.0  ;;  %v2346_v9 = vsel %vm1211_vm13, %v2328_v45, 0.0  ;;  %v2525_v53 = vsel %vm1211_vm13, %v2507_v43, 0.0 }
 0x7e0   :  { %v2815_v54 = vmul.f32 -1.442695, %v2120_v46  ;;  %2514 = vadd.xlane.f32.xlu1 %v2513_v52  ;;  %v3557_v19 = vpop.eup %3556  ;;  %v2146_v57 = vadd.f32 1.0, %v3555_v29 }
 0x7e1   :  { %v2816_v55 = vmul.f32 -1.442695, %v2121_v56  ;;  %v2147_v0 = vadd.f32 1.0, %v3557_v19 }
 0x7e2   :  { %3564 = vpow2.f32 %v2815_v54  ;;  %2350 = vadd.xlane.f32.xlu0 %v2349_v37  ;;  %v3559_v48 = vpop.eup %3558 }
 0x7e3   :  { %3566 = vpow2.f32 %v2816_v55  ;;  %v3561_v47 = vpop.eup %3560  ;;  %v2150_v28 = vadd.f32 1.0, %v3559_v48 }
 0x7e4   :  { %2353 = vadd.xlane.f32.xlu1 %v2352_v44  ;;  %3568 = vpow2.f32 %v2814_v31  ;;  %v3563_v7 = vpop.eup %3562  ;;  %v2553_v33 = vmul.f32 %v3561_v47, %v4320_v35  ;;  %v2601_v21 = vmul.f32 %v3561_v47, %v4200_v59 }
 0x7e5   :  { %3570 = vrcp.f32 %v2146_v57  ;;  %v2554_v25 = vmul.f32 %v3563_v7, %v4317_v42  ;;  %v2602_v38 = vmul.f32 %v3563_v7, %v4198_v2 }
 0x7e6   :  { %2529 = vadd.xlane.f32.xlu0 %v2528_v15  ;;  %3572 = vrcp.f32 %v2147_v0  ;;  %v2565_v34 = vsel %vm1211_vm13, %v2553_v33, 0.0  ;;  %v2613_v42 = vsel %vm1211_vm13, %v2601_v21, 0.0 }
 0x7e7   :  { %v2568_v35 = vsel %vm1211_vm13, %v2554_v25, 0.0  ;;  %v2616_v17 = vsel %vm1211_vm13, %v2602_v38, 0.0 }
 0x7e8   :  { %2532 = vadd.xlane.f32.xlu1 %v2531_v63 }
 0x7ea   :  { %2344 = vadd.xlane.f32.xlu0 %v2343_v3 }
 0x7ec   :  { %v3565_v8 = vpop.eup %3564  ;;  %2347 = vadd.xlane.f32.xlu1 %v2346_v9 }
 0x7ed   :  { %v3567_v10 = vpop.eup %3566  ;;  %v2152_v12 = vadd.f32 1.0, %v3565_v8 }
 0x7ee   :  { %2523 = vadd.xlane.f32.xlu0 %v2522_v30  ;;  %v2153_v14 = vadd.f32 1.0, %v3567_v10  ;;  %v3569_v16 = vpop.eup %3568 }
 0x7ef   :  { %3574 = vrcp.f32 %v2152_v12  ;;  %v3571_v22 = vpop.eup %3570  ;;  %v2151_v23 = vadd.f32 1.0, %v3569_v16 }
 0x7f0   :  { %2526 = vadd.xlane.f32.xlu1 %v2525_v53  ;;  %3576 = vrcp.f32 %v2153_v14  ;;  %v3573_v40 = vpop.eup %3572  ;;  %v2551_v26 = vmul.f32 %v3571_v22, %v4314_v24  ;;  %v2599_v1 = vmul.f32 %v3571_v22, %v4188_v58 }
 0x7f1   :  { %3578 = vrcp.f32 %v2150_v28  ;;  %v2552_v59 = vmul.f32 %v3573_v40, %v4309_v39  ;;  %v2600_v20 = vmul.f32 %v3573_v40, %v4186_v32 }
 0x7f2   :  { %2566 = vadd.xlane.f32.xlu0 %v2565_v34  ;;  %3580 = vrcp.f32 %v2151_v23  ;;  %v2559_v27 = vsel %vm1211_vm13, %v2551_v26, 0.0  ;;  %v2607_v24 = vsel %vm1211_vm13, %v2599_v1, 0.0 }
 0x7f3   :  { %v2562_v2 = vsel %vm1211_vm13, %v2552_v59, 0.0  ;;  %v2610_v39 = vsel %vm1211_vm13, %v2600_v20, 0.0 }
 0x7f4   :  { %2569 = vadd.xlane.f32.xlu1 %v2568_v35 }
 0x7f6   :  { %2614 = vadd.xlane.f32.xlu0 %v2613_v42 }
 0x7f8   :  { %2617 = vadd.xlane.f32.xlu1 %v2616_v17 }
 0x7f9   :  { %v3575_v18 = vpop.eup %3574 }
 0x7fa   :  { %2560 = vadd.xlane.f32.xlu0 %v2559_v27  ;;  %v3577_v46 = vpop.eup %3576  ;;  %v2557_v56 = vmul.f32 %v3575_v18, %v4328_v41 }
 0x7fb   :  { %v3579_v52 = vpop.eup %3578  ;;  %v2558_v36 = vmul.f32 %v3577_v46, %v4326_v51 }
 0x7fc   :  { %2563 = vadd.xlane.f32.xlu1 %v2562_v2  ;;  %v3581_v54 = vpop.eup %3580  ;;  %v2577_v58 = vsel %vm1211_vm13, %v2557_v56, 0.0  ;;  %v2555_v62 = vmul.f32 %v3579_v52, %v4324_v50  ;;  %v2603_v31 = vmul.f32 %v3579_v52, %v4212_v6  ;;  %v2605_v50 = vmul.f32 %v3575_v18, %v4224_v13 }
 0x7fd   :  { %v2580_v32 = vsel %vm1211_vm13, %v2558_v36, 0.0  ;;  %v2556_v29 = vmul.f32 %v3581_v54, %v4322_v49  ;;  %v2604_v51 = vmul.f32 %v3581_v54, %v4210_v4  ;;  %v2606_v49 = vmul.f32 %v3577_v46, %v4222_v11 }
 0x7fe   :  { %2608 = vadd.xlane.f32.xlu0 %v2607_v24  ;;  %v2571_v41 = vsel %vm1211_vm13, %v2555_v62, 0.0  ;;  %v2619_v37 = vsel %vm1211_vm13, %v2603_v31, 0.0  ;;  %v2625_v44 = vsel %vm1211_vm13, %v2605_v50, 0.0  ;;  %v4445_v4 = vstv %s4615_s5 }
 0x7ff   :  { %v2574_v55 = vsel %vm1211_vm13, %v2556_v29, 0.0  ;;  %v2622_v19 = vsel %vm1211_vm13, %v2604_v51, 0.0  ;;  %v2628_v6 = vsel %vm1211_vm13, %v2606_v49, 0.0 }
 0x800   :  { %2611 = vadd.xlane.f32.xlu1 %v2610_v39 }
 0x802   :  { %2578 = vadd.xlane.f32.xlu0 %v2577_v58 }
 0x804   :  { %2581 = vadd.xlane.f32.xlu1 %v2580_v32 }
 0x806   :  { %2572 = vadd.xlane.f32.xlu0 %v2571_v41 }
 0x808   :  { %2575 = vadd.xlane.f32.xlu1 %v2574_v55 }
 0x80a   :  { %2620 = vadd.xlane.f32.xlu0 %v2619_v37 }
 0x80c   :  { %2623 = vadd.xlane.f32.xlu1 %v2622_v19 }
 0x80e   :  { %2626 = vadd.xlane.f32.xlu0 %v2625_v44 }
 0x810   :  { %2629 = vadd.xlane.f32.xlu1 %v2628_v6 }
 0x85f   :  { %v2339_v61 = vpop.xlane.xlu0 %2338 }
 0x860   :  { %v2358_v13 = vadd.f32 %v4445_v4, %v2339_v61 }
 0x861   :  { %v2342_v57 = vpop.xlane.xlu1 %2341 }
 0x862   :  { %2367 = vst.msk [vmem:[%s4616_s8 + $0x10] sm:$0xff] %vm2364_vm0, %v2358_v13  ;;  %v2359_v11 = vadd.f32 %v4445_v4, %v2342_v57 }
 0x863   :  { %v2518_v15 = vpop.xlane.xlu0 %2517 }
 0x864   :  { %2368 = vst.msk [vmem:[%s4616_s8 + $0x18] sm:$0xff] %vm2364_vm0, %v2359_v11  ;;  %v2536_v60 = vadd.f32 %v2518_v15, %v4445_v4 }
 0x865   :  { %v2521_v0 = vpop.xlane.xlu1 %2520 }
 0x866   :  { %2545 = vst.msk [vmem:[%s4616_s8 + $0x10] sm:$0xff] %vm2542_vm2, %v2536_v60  ;;  %v2537_v63 = vadd.f32 %v2521_v0, %v4445_v4 }
 0x867   :  { %v2333_v45 = vpop.xlane.xlu0 %2332 }
 0x868   :  { %2546 = vst.msk [vmem:[%s4616_s8 + $0x18] sm:$0xff] %vm2542_vm2, %v2537_v63  ;;  %v2356_v48 = vadd.f32 %v4445_v4, %v2333_v45 }
 0x869   :  { %v2336_v3 = vpop.xlane.xlu1 %2335 }
 0x86a   :  { %2365 = vst.msk [vmem:[%s4616_s8] sm:$0xff] %vm2364_vm0, %v2356_v48  ;;  %v2357_v5 = vadd.f32 %v4445_v4, %v2336_v3 }
 0x86b   :  { %v2512_v47 = vpop.xlane.xlu0 %2511 }
 0x86c   :  { %2366 = vst.msk [vmem:[%s4616_s8 + $0x8] sm:$0xff] %vm2364_vm0, %v2357_v5  ;;  %v2534_v7 = vadd.f32 %v2512_v47, %v4445_v4 }
 0x86d   :  { %v2515_v9 = vpop.xlane.xlu1 %2514 }
 0x86e   :  { %2543 = vst.msk [vmem:[%s4616_s8] sm:$0xff] %vm2542_vm2, %v2534_v7  ;;  %v2535_v43 = vadd.f32 %v2515_v9, %v4445_v4 }
 0x86f   :  { %v2351_v8 = vpop.xlane.xlu0 %2350 }
 0x870   :  { %2544 = vst.msk [vmem:[%s4616_s8 + $0x8] sm:$0xff] %vm2542_vm2, %v2535_v43  ;;  %v2362_v10 = vadd.f32 %v4445_v4, %v2351_v8 }
 0x871   :  { %v2354_v30 = vpop.xlane.xlu1 %2353 }
 0x872   :  { %2371 = vst.msk [vmem:[%s4616_s8 + $0x30] sm:$0xff] %vm2364_vm0, %v2362_v10  ;;  %v2363_v33 = vadd.f32 %v4445_v4, %v2354_v30 }
 0x873   :  { %v2530_v12 = vpop.xlane.xlu0 %2529 }
 0x874   :  { %2372 = vst.msk [vmem:[%s4616_s8 + $0x38] sm:$0xff] %vm2364_vm0, %v2363_v33  ;;  %v2540_v14 = vadd.f32 %v2530_v12, %v4445_v4 }
 0x875   :  { %v2533_v16 = vpop.xlane.xlu1 %2532 }
 0x876   :  { %2549 = vst.msk [vmem:[%s4616_s8 + $0x30] sm:$0xff] %vm2542_vm2, %v2540_v14  ;;  %v2541_v53 = vadd.f32 %v2533_v16, %v4445_v4 }
 0x877   :  { %v2345_v25 = vpop.xlane.xlu0 %2344 }
 0x878   :  { %2550 = vst.msk [vmem:[%s4616_s8 + $0x38] sm:$0xff] %vm2542_vm2, %v2541_v53  ;;  %v2360_v28 = vadd.f32 %v4445_v4, %v2345_v25 }
 0x879   :  { %v2348_v34 = vpop.xlane.xlu1 %2347 }
 0x87a   :  { %2369 = vst.msk [vmem:[%s4616_s8 + $0x20] sm:$0xff] %vm2364_vm0, %v2360_v28  ;;  %v2361_v21 = vadd.f32 %v4445_v4, %v2348_v34 }
 0x87b   :  { %v2524_v22 = vpop.xlane.xlu0 %2523 }
 0x87c   :  { %2370 = vst.msk [vmem:[%s4616_s8 + $0x28] sm:$0xff] %vm2364_vm0, %v2361_v21  ;;  %v2538_v23 = vadd.f32 %v2524_v22, %v4445_v4 }
 0x87d   :  { %v2527_v35 = vpop.xlane.xlu1 %2526 }
 0x87e   :  { %2547 = vst.msk [vmem:[%s4616_s8 + $0x20] sm:$0xff] %vm2542_vm2, %v2538_v23  ;;  %v2539_v38 = vadd.f32 %v2527_v35, %v4445_v4 }
 0x87f   :  { %v2567_v40 = vpop.xlane.xlu0 %2566 }
 0x880   :  { %2548 = vst.msk [vmem:[%s4616_s8 + $0x28] sm:$0xff] %vm2542_vm2, %v2539_v38  ;;  %v2585_v42 = vadd.f32 %v2567_v40, %v4445_v4 }
 0x881   :  { %v2570_v26 = vpop.xlane.xlu1 %2569 }
 0x882   :  { %2593 = vst.msk [vmem:[%s4617_s9 + $0x10] sm:$0xff] %vm2364_vm0, %v2585_v42  ;;  %v2586_v17 = vadd.f32 %v2570_v26, %v4445_v4 }
 0x883   :  { %v2615_v59 = vpop.xlane.xlu0 %2614 }
 0x884   :  { %2594 = vst.msk [vmem:[%s4617_s9 + $0x18] sm:$0xff] %vm2364_vm0, %v2586_v17  ;;  %v2633_v27 = vadd.f32 %v2615_v59, %v4445_v4 }
 0x885   :  { %v2618_v1 = vpop.xlane.xlu1 %2617 }
 0x886   :  { %2641 = vst.msk [vmem:[%s4617_s9 + $0x10] sm:$0xff] %vm2542_vm2, %v2633_v27  ;;  %v2634_v18 = vadd.f32 %v2618_v1, %v4445_v4 }
 0x887   :  { %v2561_v2 = vpop.xlane.xlu0 %2560 }
 0x888   :  { %2642 = vst.msk [vmem:[%s4617_s9 + $0x18] sm:$0xff] %vm2542_vm2, %v2634_v18  ;;  %v2583_v20 = vadd.f32 %v2561_v2, %v4445_v4 }
 0x889   :  { %v2564_v46 = vpop.xlane.xlu1 %2563 }
 0x88a   :  { %2591 = vst.msk [vmem:[%s4617_s9] sm:$0xff] %vm2364_vm0, %v2583_v20  ;;  %v2584_v24 = vadd.f32 %v2564_v46, %v4445_v4 }
 0x88b   :  { %v2609_v56 = vpop.xlane.xlu0 %2608 }
 0x88c   :  { %2592 = vst.msk [vmem:[%s4617_s9 + $0x8] sm:$0xff] %vm2364_vm0, %v2584_v24  ;;  %v2631_v52 = vadd.f32 %v2609_v56, %v4445_v4 }
 0x88d   :  { %v2612_v39 = vpop.xlane.xlu1 %2611 }
 0x88e   :  { %2639 = vst.msk [vmem:[%s4617_s9] sm:$0xff] %vm2542_vm2, %v2631_v52  ;;  %v2632_v36 = vadd.f32 %v2612_v39, %v4445_v4 }
 0x88f   :  { %v2579_v54 = vpop.xlane.xlu0 %2578 }
 0x890   :  { %2640 = vst.msk [vmem:[%s4617_s9 + $0x8] sm:$0xff] %vm2542_vm2, %v2632_v36  ;;  %v2589_v58 = vadd.f32 %v2579_v54, %v4445_v4 }
 0x891   :  { %v2582_v62 = vpop.xlane.xlu1 %2581 }
 0x892   :  { %2597 = vst.msk [vmem:[%s4617_s9 + $0x30] sm:$0xff] %vm2364_vm0, %v2589_v58  ;;  %v2590_v32 = vadd.f32 %v2582_v62, %v4445_v4 }
 0x893   :  { %v2573_v29 = vpop.xlane.xlu0 %2572 }
 0x894   :  { %2598 = vst.msk [vmem:[%s4617_s9 + $0x38] sm:$0xff] %vm2364_vm0, %v2590_v32  ;;  %v2587_v41 = vadd.f32 %v2573_v29, %v4445_v4 }
 0x895   :  { %v2576_v31 = vpop.xlane.xlu1 %2575 }
 0x896   :  { %2595 = vst.msk [vmem:[%s4617_s9 + $0x20] sm:$0xff] %vm2364_vm0, %v2587_v41  ;;  %v2588_v55 = vadd.f32 %v2576_v31, %v4445_v4 }
 0x897   :  { %v2621_v51 = vpop.xlane.xlu0 %2620 }
 0x898   :  { %2596 = vst.msk [vmem:[%s4617_s9 + $0x28] sm:$0xff] %vm2364_vm0, %v2588_v55  ;;  %v2635_v37 = vadd.f32 %v2621_v51, %v4445_v4 }
 0x899   :  { %v2624_v50 = vpop.xlane.xlu1 %2623 }
 0x89a   :  { %2643 = vst.msk [vmem:[%s4617_s9 + $0x20] sm:$0xff] %vm2542_vm2, %v2635_v37  ;;  %v2636_v19 = vadd.f32 %v2624_v50, %v4445_v4 }
 0x89b   :  { %v2627_v49 = vpop.xlane.xlu0 %2626 }
 0x89c   :  { %2644 = vst.msk [vmem:[%s4617_s9 + $0x28] sm:$0xff] %vm2542_vm2, %v2636_v19  ;;  %v2637_v44 = vadd.f32 %v2627_v49, %v4445_v4 }
 0x89d   :  { %v2630_v6 = vpop.xlane.xlu1 %2629 }
 0x89e   :  { %2645 = vst.msk [vmem:[%s4617_s9 + $0x30] sm:$0xff] %vm2542_vm2, %v2637_v44  ;;  %v2638_v61 = vadd.f32 %v2630_v6, %v4445_v4 }
 0x8a0   :  { %2646 = vst.msk [vmem:[%s4617_s9 + $0x38] sm:$0xff] %vm2542_vm2, %v2638_v61 }

</bundles_post_ra>
